<compile_context>
chip_gen: v5e
topology: v5e:2x2
jax: 0.10.0
libtpu: 0.0.40
codegen_flags: <defaults>
</compile_context>

<pallas_src>
import jax
import jax.numpy as jnp
import numpy as np
from jax import lax
from jax.experimental import pallas as pl
from jax.experimental.pallas import tpu as pltpu

# NN_structure from the PyTorch module: 3 -> 16 -> 32 -> 1
NN_STRUCTURE = [(3, 16), (16, 32), (32, 1)]

CHUNK = 512     # in-kernel lane chunk: bounds vreg live ranges per iteration
TILE_B = 4096   # batch lanes per grid step: amortizes per-grid-step overhead


def _make_kernel(n_chunks, use_mxu):
    """Kernel for one batch tile, processed as `n_chunks` 512-lane chunks."""

    def kernel(x_ref, w1_ref, w2_ref, w3t_ref, b1t_ref, b2t_ref, b3_ref, o_ref):
        def body(c, carry):
            j = pl.multiple_of(c * CHUNK, CHUNK)
            x = x_ref[:, pl.ds(j, CHUNK)]                        # (3,  C)

            # Layer 1 (3 -> 16): K=3 is far too small for the MXU; 3 unrolled
            # VPU broadcast-FMA steps (negligible cost).
            w1 = w1_ref[...]                                     # (16, 3)
            h1 = w1[:, 0:1] * x[0:1, :]
            for k in range(1, w1_ref.shape[1]):
                h1 = h1 + w1[:, k:k + 1] * x[k:k + 1, :]
            h1 = jnp.maximum(h1 + b1t_ref[...], 0.0)             # (16, C)

            # Layer 2 (16 -> 32): ~86% of the MACs -> MXU.
            if use_mxu:
                h2 = jnp.dot(w2_ref[...], h1,
                             preferred_element_type=jnp.float32)
            else:  # VPU fallback, only used if the dot fails to lower.
                w2 = w2_ref[...]
                h2 = w2[:, 0:1] * h1[0:1, :]
                for k in range(1, w2_ref.shape[1]):
                    h2 = h2 + w2[:, k:k + 1] * h1[k:k + 1, :]
            h2 = jnp.maximum(h2 + b2t_ref[...], 0.0)             # (32, C)

            # Layer 3 (32 -> 1): elementwise multiply against the resident
            # pre-broadcast w3 tile + cross-sublane reduce (XLU).
            h3 = jnp.sum(h2 * w3t_ref[...], axis=0, keepdims=True)
            h3 = h3 + b3_ref[...]                                # (1,  C)

            # Sigmoid: exp on the EUP; exact divide so exp overflow -> 0.
            sig = 1.0 / (1.0 + jnp.exp(-h3))
            o_ref[:, pl.ds(j, CHUNK)] = sig.astype(o_ref.dtype)
            return carry

        lax.fori_loop(0, n_chunks, body, 0, unroll=True)

    return kernel


def _pick_tile(batch, max_tile):
    """Batch tile: multiple of CHUNK, and >= 2 grid steps (v7x megacore)."""
    max_tile = max(CHUNK, (max_tile // CHUNK) * CHUNK)
    half = pl.cdiv(batch, 2)
    tile = min(max_tile, max(CHUNK, pl.cdiv(half, CHUNK) * CHUNK))
    b_pad = pl.cdiv(batch, tile) * tile
    if b_pad // tile < 2:
        b_pad = 2 * tile
    return tile, b_pad


def modeler_forward(x, params, *, max_tile=TILE_B, feature_major=False,
                    use_mxu=True):
    """Forward pass of the Modeler MLP.

    x: [B, 3] float32 (or [3, B] if feature_major=True, which skips the
       wrapper transpose pass). params: [(W [out, in], b [out]), ...] in
       PyTorch nn.Linear orientation. Returns [B, 1] float32.
    """
    (w1, b1), (w2, b2), (w3, b3) = params
    x_t = jnp.asarray(x, jnp.float32)
    if not feature_major:
        x_t = x_t.T                                              # (3, B)
    in_f, B = x_t.shape
    h1_f, h2_f, out_f = w1.shape[0], w2.shape[0], w3.shape[0]

    tile, b_pad = _pick_tile(B, max_tile)
    if b_pad != B:  # pad only the remainder (no full zeros+set re-copy)
        x_t = jnp.concatenate(
            [x_t, jnp.zeros((in_f, b_pad - B), jnp.float32)], axis=1)

    # Grid-invariant operands, pre-broadcast to chunk-wide tiles once in the
    # wrapper (tiny, DMA'd once) so the kernel never re-emits lane-broadcasts.
    b1t = jnp.broadcast_to(b1.reshape(h1_f, 1), (h1_f, CHUNK)).astype(jnp.float32)
    b2t = jnp.broadcast_to(b2.reshape(h2_f, 1), (h2_f, CHUNK)).astype(jnp.float32)
    w3t = jnp.broadcast_to(w3.reshape(out_f, h2_f).T, (h2_f, CHUNK)).astype(jnp.float32)
    b3r = jnp.asarray(b3, jnp.float32).reshape(1, 1)

    n_chunks = tile // CHUNK
    resident = lambda shape: pl.BlockSpec(shape, lambda i: (0, 0))
    macs = in_f * h1_f + h1_f * h2_f + h2_f * out_f

    out_t = pl.pallas_call(
        _make_kernel(n_chunks, use_mxu),
        out_shape=jax.ShapeDtypeStruct((out_f, b_pad), jnp.float32),
        grid=(b_pad // tile,),
        in_specs=[
            pl.BlockSpec((in_f, tile), lambda i: (0, i)),   # x: tiled over batch
            resident((h1_f, in_f)),                         # w1 (16, 3)
            resident((h2_f, h1_f)),                         # w2 (32, 16)
            resident((h2_f, CHUNK)),                        # w3 broadcast tile
            resident((h1_f, CHUNK)),                        # b1 broadcast tile
            resident((h2_f, CHUNK)),                        # b2 broadcast tile
            resident((1, 1)),                               # b3
        ],
        out_specs=pl.BlockSpec((out_f, tile), lambda i: (0, i)),  # lane-dense
        compiler_params=pltpu.CompilerParams(
            dimension_semantics=("parallel",)),             # megacore on v7x
        cost_estimate=pl.CostEstimate(
            flops=2 * macs * b_pad,
            transcendentals=b_pad,
            bytes_accessed=4 * (in_f + out_f) * b_pad
            + 4 * (int(w1.size) + int(w2.size) + (2 * h2_f + h1_f) * CHUNK + 1)),
    )(x_t, w1, w2, w3t, b1t, b2t, b3r)

    return out_t[:, :B].T                                    # [B, 1]


def init_params(key):
    """PyTorch nn.Linear-style init: U(-1/sqrt(fan_in), 1/sqrt(fan_in))."""
    params = []
    for fan_in, fan_out in NN_STRUCTURE:
        key, kw, kb = jax.random.split(key, 3)
        bound = 1.0 / np.sqrt(fan_in)
        w = jax.random.uniform(kw, (fan_out, fan_in), jnp.float32, -bound, bound)
        b = jax.random.uniform(kb, (fan_out,), jnp.float32, -bound, bound)
        params.append((w, b))
    return params


def _ref_forward(x, params):
    h = x
    for i, (w, b) in enumerate(params):
        h = h @ w.T + b
        h = jnp.maximum(h, 0.0) if i < len(params) - 1 else jax.nn.sigmoid(h)
    return h


if __name__ == "__main__":
    key = jax.random.PRNGKey(0)
    params = init_params(key)

    # The module's training data XX: shape (4, 3).
    XX = jnp.array([[0, 1, 0], [1, 1, 0], [0, 0, 0], [1, 0, 0]], dtype=jnp.float32)

    # First call probes the MXU-dot path; fall back to the all-VPU variant if
    # the small-K dot ever fails to lower on this chip (keeps the script runnable).
    use_mxu = True
    try:
        out = modeler_forward(XX, params, use_mxu=True)
        jax.block_until_ready(out)
    except Exception:
        use_mxu = False
        out = modeler_forward(XX, params, use_mxu=False)
        jax.block_until_ready(out)
    np.testing.assert_allclose(np.asarray(out), np.asarray(_ref_forward(XX, params)),
                               rtol=2e-3, atol=2e-3)

    # Batch that is not a tile multiple: remainder padding + multi-step grid.
    key, kx = jax.random.split(key)
    xb = jax.random.uniform(kx, (640, 3), jnp.float32)
    outb = modeler_forward(xb, params, use_mxu=use_mxu)
    jax.block_until_ready(outb)
    np.testing.assert_allclose(np.asarray(outb), np.asarray(_ref_forward(xb, params)),
                               rtol=2e-3, atol=2e-3)

    # Feature-major, tile-aligned input: zero wrapper transpose / pad copies.
    key, kc = jax.random.split(key)
    xc = jax.random.uniform(kc, (3, 8192), jnp.float32)
    outc = modeler_forward(xc, params, feature_major=True, use_mxu=use_mxu)
    jax.block_until_ready(outc)
    np.testing.assert_allclose(np.asarray(outc), np.asarray(_ref_forward(xc.T, params)),
                               rtol=2e-3, atol=2e-3)

    print("KERNEL_OK")
</pallas_src>

<mosaic_0001>
module attributes {stable_mosaic.version = 11 : i64} {
  func.func @kernel(%arg0: i32, %arg1: memref<3x512xf32, #tpu.memory_space<vmem>>, %arg2: memref<16x3xf32, #tpu.memory_space<vmem>>, %arg3: memref<32x16xf32, #tpu.memory_space<vmem>>, %arg4: memref<32x512xf32, #tpu.memory_space<vmem>>, %arg5: memref<16x512xf32, #tpu.memory_space<vmem>>, %arg6: memref<32x512xf32, #tpu.memory_space<vmem>>, %arg7: memref<1x1xf32, #tpu.memory_space<vmem>>, %arg8: memref<1x512xf32, #tpu.memory_space<vmem>>) attributes {dimension_semantics = [#tpu.dimension_semantics<parallel>], iteration_bounds = array<i64: 2>, scalar_prefetch = 0 : i64, scratch_operands = 0 : i64, tpu.core_type = #tpu.core_type<tc>, window_params = [{transform_indices = @transform_0, window_bounds = array<i64: 3, 512>}, {pipeline_mode = #tpu.pipeline_mode<synchronous>, transform_indices = @transform_1, window_bounds = array<i64: 16, 3>}, {pipeline_mode = #tpu.pipeline_mode<synchronous>, transform_indices = @transform_2, window_bounds = array<i64: 32, 16>}, {pipeline_mode = #tpu.pipeline_mode<synchronous>, transform_indices = @transform_3, window_bounds = array<i64: 32, 512>}, {pipeline_mode = #tpu.pipeline_mode<synchronous>, transform_indices = @transform_4, window_bounds = array<i64: 16, 512>}, {pipeline_mode = #tpu.pipeline_mode<synchronous>, transform_indices = @transform_5, window_bounds = array<i64: 32, 512>}, {pipeline_mode = #tpu.pipeline_mode<synchronous>, transform_indices = @transform_6, window_bounds = array<i64: 1, 1>}, {transform_indices = @transform_7, window_bounds = array<i64: 1, 512>}]} {
    %c0_i32 = arith.constant 0 : i32
    %c512_i32 = arith.constant 512 : i32
    %0 = arith.muli %c0_i32, %c512_i32 : i32
    %1 = tpu.assume_multiple %0, 512 : i32
    %c0 = arith.constant 0 : index
    %2 = arith.index_cast %1 : i32 to index
    %3 = vector.load %arg1[%c0, %2] : memref<3x512xf32, #tpu.memory_space<vmem>>, vector<3x512xf32>
    %c0_0 = arith.constant 0 : index
    %c0_1 = arith.constant 0 : index
    %4 = vector.load %arg2[%c0_0, %c0_1] : memref<16x3xf32, #tpu.memory_space<vmem>>, vector<16x3xf32>
    %5 = vector.extract_strided_slice %4 {offsets = [0, 0], sizes = [16, 1], strides = [1, 1]} : vector<16x3xf32> to vector<16x1xf32>
    %6 = vector.extract_strided_slice %3 {offsets = [0, 0], sizes = [1, 512], strides = [1, 1]} : vector<3x512xf32> to vector<1x512xf32>
    %7 = vector.broadcast %5 : vector<16x1xf32> to vector<16x512xf32>
    %8 = vector.broadcast %6 : vector<1x512xf32> to vector<16x512xf32>
    %9 = arith.mulf %7, %8 : vector<16x512xf32>
    %10 = vector.extract_strided_slice %4 {offsets = [0, 1], sizes = [16, 1], strides = [1, 1]} : vector<16x3xf32> to vector<16x1xf32>
    %11 = vector.extract_strided_slice %3 {offsets = [1, 0], sizes = [1, 512], strides = [1, 1]} : vector<3x512xf32> to vector<1x512xf32>
    %12 = vector.broadcast %10 : vector<16x1xf32> to vector<16x512xf32>
    %13 = vector.broadcast %11 : vector<1x512xf32> to vector<16x512xf32>
    %14 = arith.mulf %12, %13 : vector<16x512xf32>
    %15 = arith.addf %9, %14 : vector<16x512xf32>
    %16 = vector.extract_strided_slice %4 {offsets = [0, 2], sizes = [16, 1], strides = [1, 1]} : vector<16x3xf32> to vector<16x1xf32>
    %17 = vector.extract_strided_slice %3 {offsets = [2, 0], sizes = [1, 512], strides = [1, 1]} : vector<3x512xf32> to vector<1x512xf32>
    %18 = vector.broadcast %16 : vector<16x1xf32> to vector<16x512xf32>
    %19 = vector.broadcast %17 : vector<1x512xf32> to vector<16x512xf32>
    %20 = arith.mulf %18, %19 : vector<16x512xf32>
    %21 = arith.addf %15, %20 : vector<16x512xf32>
    %c0_2 = arith.constant 0 : index
    %c0_3 = arith.constant 0 : index
    %22 = vector.load %arg5[%c0_2, %c0_3] : memref<16x512xf32, #tpu.memory_space<vmem>>, vector<16x512xf32>
    %23 = arith.addf %21, %22 : vector<16x512xf32>
    %cst = arith.constant 0.000000e+00 : f32
    %24 = vector.broadcast %cst : f32 to vector<16x512xf32>
    %25 = arith.maximumf %23, %24 : vector<16x512xf32>
    %c0_4 = arith.constant 0 : index
    %c0_5 = arith.constant 0 : index
    %26 = vector.load %arg3[%c0_4, %c0_5] : memref<32x16xf32, #tpu.memory_space<vmem>>, vector<32x16xf32>
    %cst_6 = arith.constant dense<0.000000e+00> : vector<32x512xf32>
    %27 = tpu.matmul %26, %25, %cst_6 {dimension_numbers = #tpu.dot_dimension_numbers<[1], [0], [0], [1], [0, 0, 1, 1], [], []>} : vector<32x16xf32>, vector<16x512xf32>, vector<32x512xf32> -> vector<32x512xf32>
    %c0_7 = arith.constant 0 : index
    %c0_8 = arith.constant 0 : index
    %28 = vector.load %arg6[%c0_7, %c0_8] : memref<32x512xf32, #tpu.memory_space<vmem>>, vector<32x512xf32>
    %29 = arith.addf %27, %28 : vector<32x512xf32>
    %cst_9 = arith.constant 0.000000e+00 : f32
    %30 = vector.broadcast %cst_9 : f32 to vector<32x512xf32>
    %31 = arith.maximumf %29, %30 : vector<32x512xf32>
    %c0_10 = arith.constant 0 : index
    %c0_11 = arith.constant 0 : index
    %32 = vector.load %arg4[%c0_10, %c0_11] : memref<32x512xf32, #tpu.memory_space<vmem>>, vector<32x512xf32>
    %33 = arith.mulf %31, %32 : vector<32x512xf32>
    %cst_12 = arith.constant dense<0.000000e+00> : vector<512xf32>
    %34 = vector.multi_reduction <add>, %33, %cst_12 [0] : vector<32x512xf32> to vector<512xf32>
    %35 = vector.shape_cast %34 : vector<512xf32> to vector<1x512xf32>
    %c0_13 = arith.constant 0 : index
    %c0_14 = arith.constant 0 : index
    %36 = vector.load %arg7[%c0_13, %c0_14] : memref<1x1xf32, #tpu.memory_space<vmem>>, vector<1x1xf32>
    %37 = vector.broadcast %36 : vector<1x1xf32> to vector<1x512xf32>
    %38 = arith.addf %35, %37 : vector<1x512xf32>
    %cst_15 = arith.constant 0.000000e+00 : f32
    %39 = vector.broadcast %cst_15 : f32 to vector<1x512xf32>
    %40 = arith.subf %39, %38 : vector<1x512xf32>
    %41 = math.exp %40 : vector<1x512xf32>
    %cst_16 = arith.constant 1.000000e+00 : f32
    %42 = vector.broadcast %cst_16 : f32 to vector<1x512xf32>
    %43 = arith.addf %42, %41 : vector<1x512xf32>
    %cst_17 = arith.constant 1.000000e+00 : f32
    %44 = vector.broadcast %cst_17 : f32 to vector<1x512xf32>
    %45 = arith.divf %44, %43 : vector<1x512xf32>
    %c0_18 = arith.constant 0 : index
    %46 = arith.index_cast %1 : i32 to index
    %47 = vector.load %arg8[%c0_18, %46] : memref<1x512xf32, #tpu.memory_space<vmem>>, vector<1x512xf32>
    tpu.vector_store %arg8[%c0_18, %46], %45 {strides = array<i32>} : memref<1x512xf32, #tpu.memory_space<vmem>>, vector<1x512xf32>,
    %c1_i32 = arith.constant 1 : i32
    return
  }
  func.func @transform_0(%arg0: i32) -> (i32, i32) {
    %c0_i32 = arith.constant 0 : i32
    %c0_i32_0 = arith.constant 0 : i32
    return %c0_i32, %arg0 : i32, i32
  }
  func.func @transform_1(%arg0: i32) -> (i32, i32) {
    %c0_i32 = arith.constant 0 : i32
    %c0_i32_0 = arith.constant 0 : i32
    %c0_i32_1 = arith.constant 0 : i32
    return %c0_i32, %c0_i32_0 : i32, i32
  }
  func.func @transform_2(%arg0: i32) -> (i32, i32) {
    %c0_i32 = arith.constant 0 : i32
    %c0_i32_0 = arith.constant 0 : i32
    %c0_i32_1 = arith.constant 0 : i32
    return %c0_i32, %c0_i32_0 : i32, i32
  }
  func.func @transform_3(%arg0: i32) -> (i32, i32) {
    %c0_i32 = arith.constant 0 : i32
    %c0_i32_0 = arith.constant 0 : i32
    %c0_i32_1 = arith.constant 0 : i32
    return %c0_i32, %c0_i32_0 : i32, i32
  }
  func.func @transform_4(%arg0: i32) -> (i32, i32) {
    %c0_i32 = arith.constant 0 : i32
    %c0_i32_0 = arith.constant 0 : i32
    %c0_i32_1 = arith.constant 0 : i32
    return %c0_i32, %c0_i32_0 : i32, i32
  }
  func.func @transform_5(%arg0: i32) -> (i32, i32) {
    %c0_i32 = arith.constant 0 : i32
    %c0_i32_0 = arith.constant 0 : i32
    %c0_i32_1 = arith.constant 0 : i32
    return %c0_i32, %c0_i32_0 : i32, i32
  }
  func.func @transform_6(%arg0: i32) -> (i32, i32) {
    %c0_i32 = arith.constant 0 : i32
    %c0_i32_0 = arith.constant 0 : i32
    %c0_i32_1 = arith.constant 0 : i32
    return %c0_i32, %c0_i32_0 : i32, i32
  }
  func.func @transform_7(%arg0: i32) -> (i32, i32) {
    %c0_i32 = arith.constant 0 : i32
    %c0_i32_0 = arith.constant 0 : i32
    return %c0_i32, %arg0 : i32, i32
  }
}

module attributes {stable_mosaic.version = 11 : i64} {
  func.func @kernel(%arg0: i32, %arg1: memref<3x512xf32, #tpu.memory_space<vmem>>, %arg2: memref<16x3xf32, #tpu.memory_space<vmem>>, %arg3: memref<32x16xf32, #tpu.memory_space<vmem>>, %arg4: memref<32x512xf32, #tpu.memory_space<vmem>>, %arg5: memref<16x512xf32, #tpu.memory_space<vmem>>, %arg6: memref<32x512xf32, #tpu.memory_space<vmem>>, %arg7: memref<1x1xf32, #tpu.memory_space<vmem>>, %arg8: memref<1x512xf32, #tpu.memory_space<vmem>>) attributes {dimension_semantics = [#tpu.dimension_semantics<parallel>], iteration_bounds = array<i64: 2>, scalar_prefetch = 0 : i64, scratch_operands = 0 : i64, tpu.core_type = #tpu.core_type<tc>, window_params = [{transform_indices = @transform_0, window_bounds = array<i64: 3, 512>}, {pipeline_mode = #tpu.pipeline_mode<synchronous>, transform_indices = @transform_1, window_bounds = array<i64: 16, 3>}, {pipeline_mode = #tpu.pipeline_mode<synchronous>, transform_indices = @transform_2, window_bounds = array<i64: 32, 16>}, {pipeline_mode = #tpu.pipeline_mode<synchronous>, transform_indices = @transform_3, window_bounds = array<i64: 32, 512>}, {pipeline_mode = #tpu.pipeline_mode<synchronous>, transform_indices = @transform_4, window_bounds = array<i64: 16, 512>}, {pipeline_mode = #tpu.pipeline_mode<synchronous>, transform_indices = @transform_5, window_bounds = array<i64: 32, 512>}, {pipeline_mode = #tpu.pipeline_mode<synchronous>, transform_indices = @transform_6, window_bounds = array<i64: 1, 1>}, {transform_indices = @transform_7, window_bounds = array<i64: 1, 512>}]} {
    %c0_i32 = arith.constant 0 : i32
    %c512_i32 = arith.constant 512 : i32
    %0 = arith.muli %c0_i32, %c512_i32 : i32
    %1 = tpu.assume_multiple %0, 512 : i32
    %c0 = arith.constant 0 : index
    %2 = arith.index_cast %1 : i32 to index
    %3 = vector.load %arg1[%c0, %2] : memref<3x512xf32, #tpu.memory_space<vmem>>, vector<3x512xf32>
    %c0_0 = arith.constant 0 : index
    %c0_1 = arith.constant 0 : index
    %4 = vector.load %arg2[%c0_0, %c0_1] : memref<16x3xf32, #tpu.memory_space<vmem>>, vector<16x3xf32>
    %5 = vector.extract_strided_slice %4 {offsets = [0, 0], sizes = [16, 1], strides = [1, 1]} : vector<16x3xf32> to vector<16x1xf32>
    %6 = vector.extract_strided_slice %3 {offsets = [0, 0], sizes = [1, 512], strides = [1, 1]} : vector<3x512xf32> to vector<1x512xf32>
    %7 = vector.broadcast %5 : vector<16x1xf32> to vector<16x512xf32>
    %8 = vector.broadcast %6 : vector<1x512xf32> to vector<16x512xf32>
    %9 = arith.mulf %7, %8 : vector<16x512xf32>
    %10 = vector.extract_strided_slice %4 {offsets = [0, 1], sizes = [16, 1], strides = [1, 1]} : vector<16x3xf32> to vector<16x1xf32>
    %11 = vector.extract_strided_slice %3 {offsets = [1, 0], sizes = [1, 512], strides = [1, 1]} : vector<3x512xf32> to vector<1x512xf32>
    %12 = vector.broadcast %10 : vector<16x1xf32> to vector<16x512xf32>
    %13 = vector.broadcast %11 : vector<1x512xf32> to vector<16x512xf32>
    %14 = arith.mulf %12, %13 : vector<16x512xf32>
    %15 = arith.addf %9, %14 : vector<16x512xf32>
    %16 = vector.extract_strided_slice %4 {offsets = [0, 2], sizes = [16, 1], strides = [1, 1]} : vector<16x3xf32> to vector<16x1xf32>
    %17 = vector.extract_strided_slice %3 {offsets = [2, 0], sizes = [1, 512], strides = [1, 1]} : vector<3x512xf32> to vector<1x512xf32>
    %18 = vector.broadcast %16 : vector<16x1xf32> to vector<16x512xf32>
    %19 = vector.broadcast %17 : vector<1x512xf32> to vector<16x512xf32>
    %20 = arith.mulf %18, %19 : vector<16x512xf32>
    %21 = arith.addf %15, %20 : vector<16x512xf32>
    %c0_2 = arith.constant 0 : index
    %c0_3 = arith.constant 0 : index
    %22 = vector.load %arg5[%c0_2, %c0_3] : memref<16x512xf32, #tpu.memory_space<vmem>>, vector<16x512xf32>
    %23 = arith.addf %21, %22 : vector<16x512xf32>
    %cst = arith.constant 0.000000e+00 : f32
    %24 = vector.broadcast %cst : f32 to vector<16x512xf32>
    %25 = arith.maximumf %23, %24 : vector<16x512xf32>
    %c0_4 = arith.constant 0 : index
    %c0_5 = arith.constant 0 : index
    %26 = vector.load %arg3[%c0_4, %c0_5] : memref<32x16xf32, #tpu.memory_space<vmem>>, vector<32x16xf32>
    %27 = vector.extract_strided_slice %26 {offsets = [0, 0], sizes = [32, 1], strides = [1, 1]} : vector<32x16xf32> to vector<32x1xf32>
    %28 = vector.extract_strided_slice %25 {offsets = [0, 0], sizes = [1, 512], strides = [1, 1]} : vector<16x512xf32> to vector<1x512xf32>
    %29 = vector.broadcast %27 : vector<32x1xf32> to vector<32x512xf32>
    %30 = vector.broadcast %28 : vector<1x512xf32> to vector<32x512xf32>
    %31 = arith.mulf %29, %30 : vector<32x512xf32>
    %32 = vector.extract_strided_slice %26 {offsets = [0, 1], sizes = [32, 1], strides = [1, 1]} : vector<32x16xf32> to vector<32x1xf32>
    %33 = vector.extract_strided_slice %25 {offsets = [1, 0], sizes = [1, 512], strides = [1, 1]} : vector<16x512xf32> to vector<1x512xf32>
    %34 = vector.broadcast %32 : vector<32x1xf32> to vector<32x512xf32>
    %35 = vector.broadcast %33 : vector<1x512xf32> to vector<32x512xf32>
    %36 = arith.mulf %34, %35 : vector<32x512xf32>
    %37 = arith.addf %31, %36 : vector<32x512xf32>
    %38 = vector.extract_strided_slice %26 {offsets = [0, 2], sizes = [32, 1], strides = [1, 1]} : vector<32x16xf32> to vector<32x1xf32>
    %39 = vector.extract_strided_slice %25 {offsets = [2, 0], sizes = [1, 512], strides = [1, 1]} : vector<16x512xf32> to vector<1x512xf32>
    %40 = vector.broadcast %38 : vector<32x1xf32> to vector<32x512xf32>
    %41 = vector.broadcast %39 : vector<1x512xf32> to vector<32x512xf32>
    %42 = arith.mulf %40, %41 : vector<32x512xf32>
    %43 = arith.addf %37, %42 : vector<32x512xf32>
    %44 = vector.extract_strided_slice %26 {offsets = [0, 3], sizes = [32, 1], strides = [1, 1]} : vector<32x16xf32> to vector<32x1xf32>
    %45 = vector.extract_strided_slice %25 {offsets = [3, 0], sizes = [1, 512], strides = [1, 1]} : vector<16x512xf32> to vector<1x512xf32>
    %46 = vector.broadcast %44 : vector<32x1xf32> to vector<32x512xf32>
    %47 = vector.broadcast %45 : vector<1x512xf32> to vector<32x512xf32>
    %48 = arith.mulf %46, %47 : vector<32x512xf32>
    %49 = arith.addf %43, %48 : vector<32x512xf32>
    %50 = vector.extract_strided_slice %26 {offsets = [0, 4], sizes = [32, 1], strides = [1, 1]} : vector<32x16xf32> to vector<32x1xf32>
    %51 = vector.extract_strided_slice %25 {offsets = [4, 0], sizes = [1, 512], strides = [1, 1]} : vector<16x512xf32> to vector<1x512xf32>
    %52 = vector.broadcast %50 : vector<32x1xf32> to vector<32x512xf32>
    %53 = vector.broadcast %51 : vector<1x512xf32> to vector<32x512xf32>
    %54 = arith.mulf %52, %53 : vector<32x512xf32>
    %55 = arith.addf %49, %54 : vector<32x512xf32>
    %56 = vector.extract_strided_slice %26 {offsets = [0, 5], sizes = [32, 1], strides = [1, 1]} : vector<32x16xf32> to vector<32x1xf32>
    %57 = vector.extract_strided_slice %25 {offsets = [5, 0], sizes = [1, 512], strides = [1, 1]} : vector<16x512xf32> to vector<1x512xf32>
    %58 = vector.broadcast %56 : vector<32x1xf32> to vector<32x512xf32>
    %59 = vector.broadcast %57 : vector<1x512xf32> to vector<32x512xf32>
    %60 = arith.mulf %58, %59 : vector<32x512xf32>
    %61 = arith.addf %55, %60 : vector<32x512xf32>
    %62 = vector.extract_strided_slice %26 {offsets = [0, 6], sizes = [32, 1], strides = [1, 1]} : vector<32x16xf32> to vector<32x1xf32>
    %63 = vector.extract_strided_slice %25 {offsets = [6, 0], sizes = [1, 512], strides = [1, 1]} : vector<16x512xf32> to vector<1x512xf32>
    %64 = vector.broadcast %62 : vector<32x1xf32> to vector<32x512xf32>
    %65 = vector.broadcast %63 : vector<1x512xf32> to vector<32x512xf32>
    %66 = arith.mulf %64, %65 : vector<32x512xf32>
    %67 = arith.addf %61, %66 : vector<32x512xf32>
    %68 = vector.extract_strided_slice %26 {offsets = [0, 7], sizes = [32, 1], strides = [1, 1]} : vector<32x16xf32> to vector<32x1xf32>
    %69 = vector.extract_strided_slice %25 {offsets = [7, 0], sizes = [1, 512], strides = [1, 1]} : vector<16x512xf32> to vector<1x512xf32>
    %70 = vector.broadcast %68 : vector<32x1xf32> to vector<32x512xf32>
    %71 = vector.broadcast %69 : vector<1x512xf32> to vector<32x512xf32>
    %72 = arith.mulf %70, %71 : vector<32x512xf32>
    %73 = arith.addf %67, %72 : vector<32x512xf32>
    %74 = vector.extract_strided_slice %26 {offsets = [0, 8], sizes = [32, 1], strides = [1, 1]} : vector<32x16xf32> to vector<32x1xf32>
    %75 = vector.extract_strided_slice %25 {offsets = [8, 0], sizes = [1, 512], strides = [1, 1]} : vector<16x512xf32> to vector<1x512xf32>
    %76 = vector.broadcast %74 : vector<32x1xf32> to vector<32x512xf32>
    %77 = vector.broadcast %75 : vector<1x512xf32> to vector<32x512xf32>
    %78 = arith.mulf %76, %77 : vector<32x512xf32>
    %79 = arith.addf %73, %78 : vector<32x512xf32>
    %80 = vector.extract_strided_slice %26 {offsets = [0, 9], sizes = [32, 1], strides = [1, 1]} : vector<32x16xf32> to vector<32x1xf32>
    %81 = vector.extract_strided_slice %25 {offsets = [9, 0], sizes = [1, 512], strides = [1, 1]} : vector<16x512xf32> to vector<1x512xf32>
    %82 = vector.broadcast %80 : vector<32x1xf32> to vector<32x512xf32>
    %83 = vector.broadcast %81 : vector<1x512xf32> to vector<32x512xf32>
    %84 = arith.mulf %82, %83 : vector<32x512xf32>
    %85 = arith.addf %79, %84 : vector<32x512xf32>
    %86 = vector.extract_strided_slice %26 {offsets = [0, 10], sizes = [32, 1], strides = [1, 1]} : vector<32x16xf32> to vector<32x1xf32>
    %87 = vector.extract_strided_slice %25 {offsets = [10, 0], sizes = [1, 512], strides = [1, 1]} : vector<16x512xf32> to vector<1x512xf32>
    %88 = vector.broadcast %86 : vector<32x1xf32> to vector<32x512xf32>
    %89 = vector.broadcast %87 : vector<1x512xf32> to vector<32x512xf32>
    %90 = arith.mulf %88, %89 : vector<32x512xf32>
    %91 = arith.addf %85, %90 : vector<32x512xf32>
    %92 = vector.extract_strided_slice %26 {offsets = [0, 11], sizes = [32, 1], strides = [1, 1]} : vector<32x16xf32> to vector<32x1xf32>
    %93 = vector.extract_strided_slice %25 {offsets = [11, 0], sizes = [1, 512], strides = [1, 1]} : vector<16x512xf32> to vector<1x512xf32>
    %94 = vector.broadcast %92 : vector<32x1xf32> to vector<32x512xf32>
    %95 = vector.broadcast %93 : vector<1x512xf32> to vector<32x512xf32>
    %96 = arith.mulf %94, %95 : vector<32x512xf32>
    %97 = arith.addf %91, %96 : vector<32x512xf32>
    %98 = vector.extract_strided_slice %26 {offsets = [0, 12], sizes = [32, 1], strides = [1, 1]} : vector<32x16xf32> to vector<32x1xf32>
    %99 = vector.extract_strided_slice %25 {offsets = [12, 0], sizes = [1, 512], strides = [1, 1]} : vector<16x512xf32> to vector<1x512xf32>
    %100 = vector.broadcast %98 : vector<32x1xf32> to vector<32x512xf32>
    %101 = vector.broadcast %99 : vector<1x512xf32> to vector<32x512xf32>
    %102 = arith.mulf %100, %101 : vector<32x512xf32>
    %103 = arith.addf %97, %102 : vector<32x512xf32>
    %104 = vector.extract_strided_slice %26 {offsets = [0, 13], sizes = [32, 1], strides = [1, 1]} : vector<32x16xf32> to vector<32x1xf32>
    %105 = vector.extract_strided_slice %25 {offsets = [13, 0], sizes = [1, 512], strides = [1, 1]} : vector<16x512xf32> to vector<1x512xf32>
    %106 = vector.broadcast %104 : vector<32x1xf32> to vector<32x512xf32>
    %107 = vector.broadcast %105 : vector<1x512xf32> to vector<32x512xf32>
    %108 = arith.mulf %106, %107 : vector<32x512xf32>
    %109 = arith.addf %103, %108 : vector<32x512xf32>
    %110 = vector.extract_strided_slice %26 {offsets = [0, 14], sizes = [32, 1], strides = [1, 1]} : vector<32x16xf32> to vector<32x1xf32>
    %111 = vector.extract_strided_slice %25 {offsets = [14, 0], sizes = [1, 512], strides = [1, 1]} : vector<16x512xf32> to vector<1x512xf32>
    %112 = vector.broadcast %110 : vector<32x1xf32> to vector<32x512xf32>
    %113 = vector.broadcast %111 : vector<1x512xf32> to vector<32x512xf32>
    %114 = arith.mulf %112, %113 : vector<32x512xf32>
    %115 = arith.addf %109, %114 : vector<32x512xf32>
    %116 = vector.extract_strided_slice %26 {offsets = [0, 15], sizes = [32, 1], strides = [1, 1]} : vector<32x16xf32> to vector<32x1xf32>
    %117 = vector.extract_strided_slice %25 {offsets = [15, 0], sizes = [1, 512], strides = [1, 1]} : vector<16x512xf32> to vector<1x512xf32>
    %118 = vector.broadcast %116 : vector<32x1xf32> to vector<32x512xf32>
    %119 = vector.broadcast %117 : vector<1x512xf32> to vector<32x512xf32>
    %120 = arith.mulf %118, %119 : vector<32x512xf32>
    %121 = arith.addf %115, %120 : vector<32x512xf32>
    %c0_6 = arith.constant 0 : index
    %c0_7 = arith.constant 0 : index
    %122 = vector.load %arg6[%c0_6, %c0_7] : memref<32x512xf32, #tpu.memory_space<vmem>>, vector<32x512xf32>
    %123 = arith.addf %121, %122 : vector<32x512xf32>
    %cst_8 = arith.constant 0.000000e+00 : f32
    %124 = vector.broadcast %cst_8 : f32 to vector<32x512xf32>
    %125 = arith.maximumf %123, %124 : vector<32x512xf32>
    %c0_9 = arith.constant 0 : index
    %c0_10 = arith.constant 0 : index
    %126 = vector.load %arg4[%c0_9, %c0_10] : memref<32x512xf32, #tpu.memory_space<vmem>>, vector<32x512xf32>
    %127 = arith.mulf %125, %126 : vector<32x512xf32>
    %cst_11 = arith.constant dense<0.000000e+00> : vector<512xf32>
    %128 = vector.multi_reduction <add>, %127, %cst_11 [0] : vector<32x512xf32> to vector<512xf32>
    %129 = vector.shape_cast %128 : vector<512xf32> to vector<1x512xf32>
    %c0_12 = arith.constant 0 : index
    %c0_13 = arith.constant 0 : index
    %130 = vector.load %arg7[%c0_12, %c0_13] : memref<1x1xf32, #tpu.memory_space<vmem>>, vector<1x1xf32>
    %131 = vector.broadcast %130 : vector<1x1xf32> to vector<1x512xf32>
    %132 = arith.addf %129, %131 : vector<1x512xf32>
    %cst_14 = arith.constant 0.000000e+00 : f32
    %133 = vector.broadcast %cst_14 : f32 to vector<1x512xf32>
    %134 = arith.subf %133, %132 : vector<1x512xf32>
    %135 = math.exp %134 : vector<1x512xf32>
    %cst_15 = arith.constant 1.000000e+00 : f32
    %136 = vector.broadcast %cst_15 : f32 to vector<1x512xf32>
    %137 = arith.addf %136, %135 : vector<1x512xf32>
    %cst_16 = arith.constant 1.000000e+00 : f32
    %138 = vector.broadcast %cst_16 : f32 to vector<1x512xf32>
    %139 = arith.divf %138, %137 : vector<1x512xf32>
    %c0_17 = arith.constant 0 : index
    %140 = arith.index_cast %1 : i32 to index
    %141 = vector.load %arg8[%c0_17, %140] : memref<1x512xf32, #tpu.memory_space<vmem>>, vector<1x512xf32>
    tpu.vector_store %arg8[%c0_17, %140], %139 {strides = array<i32>} : memref<1x512xf32, #tpu.memory_space<vmem>>, vector<1x512xf32>,
    %c1_i32 = arith.constant 1 : i32
    return
  }
  func.func @transform_0(%arg0: i32) -> (i32, i32) {
    %c0_i32 = arith.constant 0 : i32
    %c0_i32_0 = arith.constant 0 : i32
    return %c0_i32, %arg0 : i32, i32
  }
  func.func @transform_1(%arg0: i32) -> (i32, i32) {
    %c0_i32 = arith.constant 0 : i32
    %c0_i32_0 = arith.constant 0 : i32
    %c0_i32_1 = arith.constant 0 : i32
    return %c0_i32, %c0_i32_0 : i32, i32
  }
  func.func @transform_2(%arg0: i32) -> (i32, i32) {
    %c0_i32 = arith.constant 0 : i32
    %c0_i32_0 = arith.constant 0 : i32
    %c0_i32_1 = arith.constant 0 : i32
    return %c0_i32, %c0_i32_0 : i32, i32
  }
  func.func @transform_3(%arg0: i32) -> (i32, i32) {
    %c0_i32 = arith.constant 0 : i32
    %c0_i32_0 = arith.constant 0 : i32
    %c0_i32_1 = arith.constant 0 : i32
    return %c0_i32, %c0_i32_0 : i32, i32
  }
  func.func @transform_4(%arg0: i32) -> (i32, i32) {
    %c0_i32 = arith.constant 0 : i32
    %c0_i32_0 = arith.constant 0 : i32
    %c0_i32_1 = arith.constant 0 : i32
    return %c0_i32, %c0_i32_0 : i32, i32
  }
  func.func @transform_5(%arg0: i32) -> (i32, i32) {
    %c0_i32 = arith.constant 0 : i32
    %c0_i32_0 = arith.constant 0 : i32
    %c0_i32_1 = arith.constant 0 : i32
    return %c0_i32, %c0_i32_0 : i32, i32
  }
  func.func @transform_6(%arg0: i32) -> (i32, i32) {
    %c0_i32 = arith.constant 0 : i32
    %c0_i32_0 = arith.constant 0 : i32
    %c0_i32_1 = arith.constant 0 : i32
    return %c0_i32, %c0_i32_0 : i32, i32
  }
  func.func @transform_7(%arg0: i32) -> (i32, i32) {
    %c0_i32 = arith.constant 0 : i32
    %c0_i32_0 = arith.constant 0 : i32
    return %c0_i32, %arg0 : i32, i32
  }
}

</mosaic_0001>

<bundles_post_ra>
// kernel: tpu_custom_call.1
= control target key start
LH: loop header
LB: loop body
LE: loop exit
PB: predicated region body
PF: predicated region fallthrough
CT: control target
= control target key end

     0   :  { %s1488_s0 = inlined_call_operand.hbm [shape: f32[3,1024], index: 0, kind: input, shape index: {}]   ;;  %s1489_s1 = inlined_call_operand.vmem [shape: f32[16,3], index: 1, kind: input, shape index: {}]   ;;  %s1490_s2 = inlined_call_operand.vmem [shape: f32[32,16], index: 2, kind: input, shape index: {}]   ;;  %s1491_s3 = inlined_call_operand.hbm [shape: f32[32,512], index: 3, kind: input, shape index: {}]   ;;  %s1492_s4 = inlined_call_operand.vmem [shape: f32[16,512], index: 4, kind: input, shape index: {}]   ;;  %s1493_s5 = inlined_call_operand.hbm [shape: f32[32,512], index: 5, kind: input, shape index: {}]   ;;  %s1494_s6 = inlined_call_operand.<no memory space> [shape: f32[1,1], index: 6, kind: input, shape index: {}]   ;;  %s1495_s7 = inlined_call_operand.hbm [shape: f32[1,1024], index: 7, kind: output, shape index: {}]  }
   0x1   :  { %1496 = sst [smem:[#allocation13_spill]] %s1491_s3  ;;  %v12_v0 = vstv %s1494_s6 }
   0x2   :  { %13 = vst [vmem:[#allocation2] sm:$0x1] %v12_v0 }
   0x3   :  { %14 = vsyncpa [#allocation4], 0 }
   0x4   :  { %16 = vsyncpa [#allocation4 + $0x1], 0 }
   0x5   :  { %17 = vsyncpa [#allocation7], 0 }
   0x6   :  { %18 = vsyncpa [#allocation5], 0 }
   0x7   :  { %20 = vsyncpa [#allocation5 + $0x1], 0  ;;  %s1251_s26 = smov 0   ;;  %s1253_s27 = smov 0  }
   0x8   :  { %s1255_s28 = smov 0   ;;  %s1257_s29 = smov 0  }
   0x9 LB: > { %s1497_s3 = sld [smem:[#allocation13_spill]]  ;;  %s1275_s9 = sadd.s32 4294967295, %s1199_s29   ;;  %s1199_s29 = sphi %s1257_s29, %s1512_s29   ;;  %s1195_s28 = sphi %s1255_s28, %s1511_s28   ;;  %s1191_s27 = sphi %s1253_s27, %s1510_s27   ;;  %s1187_s26 = sphi %s1251_s26, %s1509_s26  }
   0xa   : > { %p911_p0 = scmp.ge.s32.totalorder %s1199_s29, 1  ;;  %p47_p1 = scmp.eq.s32.totalorder %s1275_s9, 0 }
   0xb   : > { %p209_p2 = scmp.lt.s32.totalorder %s1199_s29, 3  ;;  %s1201_s11 = smov [#allocation6]  }
   0xc   : > { %s228_s12 = sshll.u32 %s1201_s11, 4  ;;  %s243_s15 = sshll.u32 %s1493_s5, 4  ;;  %s229_s12 = int_to_ptr.vmem [resolvable:$true] %s228_s12  ;;  %s244_s15 = int_to_ptr.hbm [resolvable:$true] %s243_s15 }
   0xd   : > { %p1280_p3 = pnand %p911_p0, %p209_p2  ;;  %s1202_s16 = smov [#allocation8]  }
   0xe   : > { %s245_s17 = sshll.u32 %s1202_s16, 4  ;;  %s1203_s18 = smov 512   ;;  %s246_s17 = int_to_ptr.vmem [resolvable:$true] %s245_s17 }
   0xf   : > { %s226_s8 = sshll.u32 %s1497_s3, 4  ;;  %p956_p4 = pneg %p1280_p3  ;;  %s227_s8 = int_to_ptr.hbm [resolvable:$true] %s226_s8 }
  0x10   : > { %s1204_s19 = smov 32   ;;  %s910_s20 = sadd.s32 4294967294, %s1199_s29  }
  0x11   : > { %p957_p6 = pnand %p956_p4, %p47_p1  ;;  %s1294_s21 = sadd.s32 1, %s1199_s29  }
  0x12   : > { %s30_s22 = ssub.s32 %s1199_s29, %s1294_s21  ;;  %s33_s23 = sadd.s32 1, %s1195_s28 }
  0x13   : > { %959 = dma.hbm_to_vmem [thread:$0]  (!%p957_p6), %s227_s8, 2048, %s229_s12, [#allocation7], %s1203_s18, %s1203_s18, %s1204_s19  }
  0x14   : > { %962 = dma.hbm_to_vmem [thread:$0]  (!%p957_p6), %s244_s15, 2048, %s246_s17, [#allocation7], %s1203_s18, %s1203_s18, %s1204_s19  }
  0x15   : > { %p31_p7 = scmp.eq.s32.totalorder %s30_s22, 0  ;;  %p40_p8 = scmp.ne.s32.totalorder %s1195_s28, %s1191_s27 }
  0x16   : > { %p41_p9 = scmp.eq.s32.totalorder %s1199_s29, 0  ;;  %p46_p10 = scmp.ne.s32.totalorder %s1191_s27, %s1187_s26 }
  0x17   : > { %s1305_s24 = scalar_select %p31_p7, %s1195_s28, %s33_s23  }
  0x18   : > { %p1307_p11 = por %p41_p9, %p40_p8  ;;  %p1313_p12 = por %p47_p1, %p46_p10 }
  0x19   : > { %p196_p13 = scmp.eq.s32.totalorder %s1275_s9, 1  ;;  %p202_p0 = scmp.eq.s32.totalorder %s910_s20, 1 }
  0x1a   : > { %p973_p2 = scmp.lt.s32.totalorder %s1199_s29, 2  ;;  %s262_s30 = sand.u32 1, %s1195_s28  }
  0x1b   : > { %p1320_p4 = por %p196_p13, %p40_p8  ;;  %p1324_p6 = por %p202_p0, %p46_p10 }
  0x1c   : > { %s915_s12 = sshll.u32 %s262_s30, 4  ;;  %s943_s13 = sshll.u32 %s1199_s29, 4 }
  0x1d   : > { %s271_s16 = scalar_lea.hbm %s1488_s0, %s943_s13  ;;  %s266_s17 = scalar_lea.vmem [#allocation3], %s915_s12 }
  0x1e   : > { %s275_s18 = sshll.u32 %s266_s17, 4  ;;  %s273_s19 = sshll.u32 %s271_s16, 4  ;;  %s276_s18 = int_to_ptr.vmem [resolvable:$true] %s275_s18  ;;  %s274_s19 = int_to_ptr.hbm [resolvable:$true] %s273_s19 }
  0x1f   : > { %p1334_p7 = pnand %p973_p2, %p1307_p11  ;;  %s263_s22 = scalar_lea.sflag [#allocation4], %s262_s30 }
  0x20   : > { %s1099_s23 = sshra.s32 %s274_s19, 4  ;;  %s1106_s14 = scalar_lea.hbm %s1488_s0, 32  ;;  %s1100_s23 = int_to_ptr.hbm [resolvable:$true] %s1099_s23 }
  0x21   : > { %s1101_s3 = scalar_lea.hbm %s1100_s23, 16  ;;  %p1103_p9 = pneg %p1334_p7 }
  0x22   : > { %p1102_p8 = scmp.ne.s32.totalorder %s1100_s23, %s1101_s3  ;;  %p1107_p11 = scmp.lt.s32.totalorder %s1100_s23, %s1488_s0 }
  0x23   : > { %p1108_p0 = scmp.lt.s32.totalorder %s1106_s14, %s1101_s3 }
  0x24   : > { %p1104_p10 = pnand %p1103_p9, %p1102_p8 }
  0x25   : > { %p1109_p2 = por %p1108_p0, %p1107_p11 }
  0x26   : > { %p1105_p13 = pneg %p1104_p10 }
  0x28   : > { %p1110_p5 = pnand %p1109_p2, %p1105_p13 }
  0x2a   : > { %1113 = shalt.err (!%p1110_p5)
}
  0x2b   : > { %966 = dma.hbm_to_vmem [thread:$0]  (!%p1334_p7), %s274_s19, 256, %s276_s18, %s263_s22  }
  0x2c   : > { %284 = sbr.rel (%p1280_p3) target bundleno = 409 (0x199), region = 48  ;;  %s1351_s30 = sand.u32 (!%p1280_p3), 1, %s1191_s27  }
  0x2d   : > { %s919_s16 = sshll.u32 (!%p1280_p3), %s1351_s30, 4  ;;  %s287_s17 = scalar_lea.sflag (!%p1280_p3), [#allocation4], %s1351_s30 }
  0x2e   : > { %s290_s12 = scalar_lea.vmem (!%p1280_p3), [#allocation3], %s919_s16 }
  0x31   : > { %1174 = dma.done.wait (%p1313_p12), %s287_s17, 256  }
  0x32   : > { %1176 = vsyncadd (%p1313_p12), %s287_s17, 4294967040 }
  0x33   : > { %1178 = dma.done.wait (%p47_p1), [#allocation7], 4096  }
  0x34   : > { %1180 = vsyncadd (%p47_p1), [#allocation7], 4294963200  ;;  %v1205_v1 = vmov 0   ;;  %v1206_v2 = vmov 2   ;;  %v337_v3 = vld [vmem:[%s1489_s1 + $0x8] sm:$0xff]  ;;  %v336_v4 = vld [vmem:[%s1489_s1] sm:$0xff] }
  0x35   : > { %1018 = vset.pattern.permute.xlu1 %v1205_v1  ;;  %1016 = vset.pattern.permute.xlu0 %v1205_v1  ;;  %v1207_v5 = vmov 1   ;;  %v334_v7 = vld [vmem:[%s290_s12] sm:$0x77]  ;;  %v335_v8 = vld [vmem:[%s290_s12 + $0x8] sm:$0x77]  ;;  %vm486_vm0 = vcmask 130048  }
  0x36   : > { %1020 = vset.pattern.permute.xlu2 %v1206_v2  ;;  %345 = vperm.xlu0 %1016, %v337_v3   ;;  %v414_v9 = vperm.slane %v334_v7, 2  ;;  %v415_v10 = vperm.slane %v334_v7, 6  ;;  %v416_v11 = vperm.slane %v335_v8, 2  ;;  %v417_v12 = vperm.slane %v335_v8, 6  ;;  %v446_v63 = vld [vmem:[%s1492_s4 + $0x20] sm:$0xff]  ;;  %s922_s17 = sshll.u32 %s1351_s30, 2 }
  0x37   : > { %340 = vperm.xlu1 %1018, %v336_v4   ;;  %411 = vperm.xlu2 %1020, %v337_v3   ;;  %v350_v14 = vperm.slane %v334_v7, 0  ;;  %v351_v15 = vperm.slane %v334_v7, 4  ;;  %v352_v16 = vperm.slane %v335_v8, 0  ;;  %v353_v17 = vperm.slane %v335_v8, 4  ;;  %s940_s12 = sshll.u32 %s1275_s9, 2  ;;  %s331_s18 = scalar_lea.vmem [#allocation9], %s922_s17 }
  0x38   : > { %v378_v19 = vperm.slane %v334_v7, 1  ;;  %v379_v20 = vperm.slane %v334_v7, 5  ;;  %v380_v21 = vperm.slane %v335_v8, 1  ;;  %v381_v22 = vperm.slane %v335_v8, 5  ;;  %v442_v7 = vld [vmem:[%s1492_s4] sm:$0xff]  ;;  %s816_s10 = scalar_lea.hbm %s1495_s7, %s940_s12  ;;  %s818_s19 = sshll.u32 %s331_s18, 4  ;;  %s819_s19 = int_to_ptr.vmem [resolvable:$true] %s818_s19 }
  0x39   : > { %v422_v23 = vperm.slane %v414_v9, 2  ;;  %v423_v24 = vperm.slane %v415_v10, 2  ;;  %v424_v25 = vperm.slane %v416_v11, 2  ;;  %v425_v26 = vperm.slane %v417_v12, 2  ;;  %s820_s6 = sshll.u32 %s816_s10, 4  ;;  %s806_s20 = scalar_lea.sflag [#allocation5], %s1351_s30  ;;  %s821_s6 = int_to_ptr.hbm [resolvable:$true] %s820_s6 }
  0x3a   : > { %v358_v27 = vperm.slane %v350_v14, 0  ;;  %v359_v28 = vperm.slane %v351_v15, 0  ;;  %v360_v29 = vperm.slane %v352_v16, 0  ;;  %v361_v30 = vperm.slane %v353_v17, 0  ;;  %v443_v15 = vld [vmem:[%s1492_s4 + $0x8] sm:$0xff]  ;;  %v444_v16 = vld [vmem:[%s1492_s4 + $0x10] sm:$0xff] }
  0x3b   : > { %v386_v32 = vperm.slane %v378_v19, 1  ;;  %v387_v33 = vperm.slane %v379_v20, 1  ;;  %v388_v34 = vperm.slane %v380_v21, 1  ;;  %v389_v35 = vperm.slane %v381_v22, 1  ;;  %v445_v17 = vld [vmem:[%s1492_s4 + $0x18] sm:$0xff]  ;;  %s1143_s22 = sshra.s32 %s821_s6, 4  ;;  %s1144_s22 = int_to_ptr.hbm [resolvable:$true] %s1143_s22 }
  0x3c   : > { %vm793_vm6 = vcmask 1040384   ;;  %s1145_s23 = scalar_lea.hbm %s1144_s22, 4  ;;  %s1149_s15 = scalar_lea.hbm %s1495_s7, 8 }
  0x3d   : > { %p1146_p1 = scmp.ne.s32.totalorder %s1144_s22, %s1145_s23  ;;  %p1150_p12 = scmp.lt.s32.totalorder %s1144_s22, %s1495_s7 }
  0x3e   : > { %1017 = vset.pattern.permute.xlu0 %v1207_v5  ;;  %p1151_p7 = scmp.lt.s32.totalorder %s1149_s15, %s1145_s23 }
  0x3f   : > { %1019 = vset.pattern.permute.xlu1 %v1207_v5  ;;  %375 = vperm.xlu0 %1017, %v337_v3   ;;  %v449_v5 = vld [vmem:[%s1492_s4 + $0x38] sm:$0xff]  ;;  %p1147_p3 = pnand %p1146_p1, %p1320_p4 }
  0x40   : > { %371 = vperm.xlu1 %1019, %v336_v4   ;;  %407 = vperm.xlu2 %1020, %v336_v4   ;;  %v448_v4 = vld [vmem:[%s1492_s4 + $0x30] sm:$0xff]  ;;  %p1152_p8 = por %p1151_p7, %p1150_p12 }
  0x41   : > { %p1148_p5 = pneg %p1147_p3 }
  0x43   : > { %p1153_p9 = pnand %p1152_p8, %p1148_p5 }
  0x47   : > { %1022 = vset.pattern.permute.xlu0 %v1205_v1 }
  0x48   : > { %1021 = vset.pattern.permute.xlu1 %v1205_v1  ;;  %v447_v1 = vld [vmem:[%s1492_s4 + $0x28] sm:$0xff] }
  0x91   : > { %v412_v6 = vpop.permute.xlu2 %411 }
  0x92   : > { %v430_v36 = vmul.f32 %v422_v23, %v412_v6  ;;  %v431_v37 = vmul.f32 %v423_v24, %v412_v6  ;;  %v432_v38 = vmul.f32 %v424_v25, %v412_v6  ;;  %v433_v39 = vmul.f32 %v425_v26, %v412_v6 }
  0x9a   : > { %v408_v31 = vpop.permute.xlu2 %407 }
  0x9b   : > { %v426_v40 = vmul.f32 %v422_v23, %v408_v31  ;;  %v427_v41 = vmul.f32 %v423_v24, %v408_v31  ;;  %v428_v42 = vmul.f32 %v424_v25, %v408_v31  ;;  %v429_v43 = vmul.f32 %v425_v26, %v408_v31 }
  0xa8   : > { %v346_v13 = vpop.permute.xlu0 %345 }
  0xa9   : > { %v341_v18 = vpop.permute.xlu1 %340  ;;  %v366_v44 = vmul.f32 %v358_v27, %v346_v13  ;;  %v367_v45 = vmul.f32 %v359_v28, %v346_v13  ;;  %v368_v46 = vmul.f32 %v360_v29, %v346_v13  ;;  %v369_v47 = vmul.f32 %v361_v30, %v346_v13 }
  0xaa   : > { %v362_v48 = vmul.f32 %v358_v27, %v341_v18  ;;  %v363_v49 = vmul.f32 %v359_v28, %v341_v18  ;;  %v364_v50 = vmul.f32 %v360_v29, %v341_v18  ;;  %v365_v51 = vmul.f32 %v361_v30, %v341_v18  ;;  %v699_v30 = vld [vmem:[#allocation2] sm:$0x1] }
  0xab   : > { %702 = vperm.xlu1 %1021, %v699_v30  }
  0xb1   : > { %v376_v52 = vpop.permute.xlu0 %375 }
  0xb2   : > { %v372_v53 = vpop.permute.xlu1 %371  ;;  %v394_v54 = vmul.f32 %v386_v32, %v376_v52  ;;  %v395_v55 = vmul.f32 %v387_v33, %v376_v52  ;;  %v396_v56 = vmul.f32 %v388_v34, %v376_v52  ;;  %v397_v57 = vmul.f32 %v389_v35, %v376_v52  ;;  %v471_v52 = vld [vmem:[#allocation8 + $0x8] sm:$0xff] }
  0xb3   : > { %v390_v58 = vmul.f32 %v386_v32, %v372_v53  ;;  %v391_v59 = vmul.f32 %v387_v33, %v372_v53  ;;  %v392_v60 = vmul.f32 %v388_v34, %v372_v53  ;;  %v393_v61 = vmul.f32 %v389_v35, %v372_v53  ;;  %v478_v53 = vld [vmem:[#allocation8 + $0x40] sm:$0xff] }
  0xb4   : > { %v402_v62 = vadd.f32 %v394_v54, %v366_v44  ;;  %v403_v0 = vadd.f32 %v395_v55, %v367_v45  ;;  %v404_v2 = vadd.f32 %v396_v56, %v368_v46  ;;  %v405_v3 = vadd.f32 %v397_v57, %v369_v47  ;;  %v479_v54 = vld [vmem:[#allocation8 + $0x48] sm:$0xff] }
  0xb5   : > { %v398_v6 = vadd.f32 %v390_v58, %v362_v48  ;;  %v399_v8 = vadd.f32 %v391_v59, %v363_v49  ;;  %v400_v9 = vadd.f32 %v392_v60, %v364_v50  ;;  %v401_v10 = vadd.f32 %v393_v61, %v365_v51  ;;  %v470_v49 = vld [vmem:[#allocation8] sm:$0xff]  ;;  %v475_v51 = vld [vmem:[#allocation8 + $0x28] sm:$0xff] }
  0xb6   : > { %v438_v11 = vadd.f32 %v430_v36, %v402_v62  ;;  %v439_v12 = vadd.f32 %v431_v37, %v403_v0  ;;  %v440_v13 = vadd.f32 %v432_v38, %v404_v2  ;;  %v441_v14 = vadd.f32 %v433_v39, %v405_v3  ;;  %v466_v39 = vld [vmem:[%s1490_s2] sm:$0xff]  ;;  %v472_v2 = vld [vmem:[#allocation8 + $0x10] sm:$0xff] }
  0xb7   : > { %v434_v18 = vadd.f32 %v426_v40, %v398_v6  ;;  %v435_v19 = vadd.f32 %v427_v41, %v399_v8  ;;  %v436_v20 = vadd.f32 %v428_v42, %v400_v9  ;;  %v437_v21 = vadd.f32 %v429_v43, %v401_v10  ;;  %v467_v40 = vld [vmem:[%s1490_s2 + $0x8] sm:$0xff]  ;;  %v468_v41 = vld [vmem:[%s1490_s2 + $0x10] sm:$0xff]  ;;  %v469_v42 = vld [vmem:[%s1490_s2 + $0x18] sm:$0xff] }
  0xb8   : > { %v454_v22 = vadd.f32 %v446_v63, %v438_v11  ;;  %v455_v23 = vadd.f32 %v447_v1, %v439_v12  ;;  %v456_v24 = vadd.f32 %v448_v4, %v440_v13  ;;  %v457_v25 = vadd.f32 %v449_v5, %v441_v14  ;;  %v474_v50 = vld [vmem:[#allocation8 + $0x20] sm:$0xff]  ;;  %v473_v4 = vld [vmem:[#allocation8 + $0x18] sm:$0xff]  ;;  %v632_v10 = vld [vmem:[#allocation6 + $0x8] sm:$0xff] }
  0xb9   : > { %v450_v26 = vadd.f32 %v442_v7, %v434_v18  ;;  %v451_v27 = vadd.f32 %v443_v15, %v435_v19  ;;  %v452_v28 = vadd.f32 %v444_v16, %v436_v20  ;;  %v453_v29 = vadd.f32 %v445_v17, %v437_v21  ;;  %v631_v1 = vld [vmem:[#allocation6] sm:$0xff]  ;;  %v476_v7 = vld [vmem:[#allocation8 + $0x30] sm:$0xff]  ;;  %v477_v8 = vld [vmem:[#allocation8 + $0x38] sm:$0xff] }
  0xba   : > { %v462_v31 = vmax.f32 %v454_v22, 0.0  ;;  %v463_v32 = vmax.f32 %v455_v23, 0.0  ;;  %v464_v33 = vmax.f32 %v456_v24, 0.0  ;;  %v465_v34 = vmax.f32 %v457_v25, 0.0  ;;  %v635_v11 = vld [vmem:[#allocation6 + $0x20] sm:$0xff]  ;;  %v636_v12 = vld [vmem:[#allocation6 + $0x28] sm:$0xff] }
  0xbb   : > { %v458_v35 = vmax.f32 %v450_v26, 0.0  ;;  %v459_v36 = vmax.f32 %v451_v27, 0.0  ;;  %v460_v37 = vmax.f32 %v452_v28, 0.0  ;;  %v461_v38 = vmax.f32 %v453_v29, 0.0  ;;  %v639_v14 = vld [vmem:[#allocation6 + $0x40] sm:$0xff]  ;;  %v480_v16 = vld [vmem:[#allocation8 + $0x50] sm:$0xff] }
  0xbc   : > { %513 = vmatpush.msra.mxu0 %v462_v31  ;;  %542 = vmatpush.msra.mxu1 %v463_v32  ;;  %v481_v17 = vld [vmem:[#allocation8 + $0x58] sm:$0xff]  ;;  %v640_v22 = vld [vmem:[#allocation6 + $0x48] sm:$0xff]  ;;  %v482_v23 = vld [vmem:[#allocation8 + $0x60] sm:$0xff] }
  0xbd   : > { %571 = vmatpush.msra.mxu2 %v464_v33  ;;  %600 = vmatpush.msra.mxu3 %v465_v34  ;;  %v483_v24 = vld [vmem:[#allocation8 + $0x68] sm:$0xff] }
  0xbe   : > { %514 = vmatpush.msra.mxu0 %v458_v35  ;;  %543 = vmatpush.msra.mxu1 %v459_v36 }
  0xbf   : > { %572 = vmatpush.msra.mxu2 %v460_v37  ;;  %601 = vmatpush.msra.mxu3 %v461_v38 }
  0xc0   : > { %923 = vmatmul.msk.f32.vlgmr.msra.gmra.mxu0 %vm486_vm0, %v466_v39  ;;  %927 = vmatmul.msk.f32.vlgmr.msra.gmra.mxu1 %vm486_vm0, %v466_v39 }
  0xc1   : > { %931 = vmatmul.msk.f32.vlgmr.msra.gmra.mxu2 %vm486_vm0, %v466_v39  ;;  %935 = vmatmul.msk.f32.vlgmr.msra.gmra.mxu3 %vm486_vm0, %v466_v39 }
  0xc8   : > { %924 = vmatmul.msk.f32.gmra.mxu0 %vm486_vm0, %v467_v40  ;;  %928 = vmatmul.msk.f32.gmra.mxu1 %vm486_vm0, %v467_v40 }
  0xc9   : > { %932 = vmatmul.msk.f32.gmra.mxu2 %vm486_vm0, %v467_v40  ;;  %936 = vmatmul.msk.f32.gmra.mxu3 %vm486_vm0, %v467_v40 }
  0xd0   : > { %925 = vmatmul.msk.f32.gmra.mxu0 %vm486_vm0, %v468_v41  ;;  %929 = vmatmul.msk.f32.gmra.mxu1 %vm486_vm0, %v468_v41 }
  0xd1   : > { %933 = vmatmul.msk.f32.gmra.mxu2 %vm486_vm0, %v468_v41  ;;  %937 = vmatmul.msk.f32.gmra.mxu3 %vm486_vm0, %v468_v41 }
  0xd8   : > { %926 = vmatmul.msk.f32.gmra.mxu0 %vm486_vm0, %v469_v42  ;;  %930 = vmatmul.msk.f32.gmra.mxu1 %vm486_vm0, %v469_v42 }
  0xd9   : > { %934 = vmatmul.msk.f32.gmra.mxu2 %vm486_vm0, %v469_v42  ;;  %938 = vmatmul.msk.f32.gmra.mxu3 %vm486_vm0, %v469_v42 }
 0x13d   : > { %v516_v43 = vpop.f32.mrf.mxu0  ;;  %v545_v44 = vpop.f32.mrf.mxu1 }
 0x13e   : > { %v517_v55 = vadd.f32 %v516_v43, %v470_v49  ;;  %v546_v60 = vadd.f32 %v545_v44, %v471_v52  ;;  %v643_v43 = vld [vmem:[#allocation6 + $0x60] sm:$0xff]  ;;  %v644_v44 = vld [vmem:[#allocation6 + $0x68] sm:$0xff]  ;;  %v634_v52 = vld [vmem:[#allocation6 + $0x18] sm:$0xff] }
 0x140   : > { %v615_v3 = vmax.f32 %v517_v55, 0.0  ;;  %v616_v9 = vmax.f32 %v546_v60, 0.0 }
 0x142   : > { %v647_v25 = vmul.f32 %v631_v1, %v615_v3  ;;  %v648_v30 = vmul.f32 %v632_v10, %v616_v9 }
 0x144   : > { %v574_v45 = vpop.f32.mrf.mxu2  ;;  %v603_v46 = vpop.f32.mrf.mxu3 }
 0x145   : > { %v519_v47 = vpop.f32.mrf.mxu0  ;;  %v548_v48 = vpop.f32.mrf.mxu1  ;;  %v575_v18 = vadd.f32 %v574_v45, %v472_v2  ;;  %v604_v19 = vadd.f32 %v603_v46, %v473_v4 }
 0x146   : > { %v520_v56 = vadd.f32 %v519_v47, %v474_v50  ;;  %v549_v57 = vadd.f32 %v548_v48, %v475_v51  ;;  %v637_v47 = vld [vmem:[#allocation6 + $0x30] sm:$0xff]  ;;  %v638_v48 = vld [vmem:[#allocation6 + $0x38] sm:$0xff] }
 0x147   : > { %v617_v39 = vmax.f32 %v575_v18, 0.0  ;;  %v618_v40 = vmax.f32 %v604_v19, 0.0  ;;  %v633_v51 = vld [vmem:[#allocation6 + $0x10] sm:$0xff] }
 0x148   : > { %v619_v5 = vmax.f32 %v520_v56, 0.0  ;;  %v620_v6 = vmax.f32 %v549_v57, 0.0 }
 0x149   : > { %v649_v1 = vmul.f32 %v633_v51, %v617_v39  ;;  %v650_v2 = vmul.f32 %v634_v52, %v618_v40 }
 0x14a   : > { %v651_v26 = vmul.f32 %v635_v11, %v619_v5  ;;  %v652_v27 = vmul.f32 %v636_v12, %v620_v6 }
 0x14c   : > { %v577_v58 = vpop.f32.mrf.mxu2  ;;  %v606_v59 = vpop.f32.mrf.mxu3  ;;  %v663_v45 = vadd.f32 %v651_v26, %v647_v25  ;;  %v672_v46 = vadd.f32 %v652_v27, %v648_v30 }
 0x14d   : > { %v522_v61 = vpop.f32.mrf.mxu0  ;;  %v551_v62 = vpop.f32.mrf.mxu1  ;;  %v578_v20 = vadd.f32 %v577_v58, %v476_v7  ;;  %v607_v21 = vadd.f32 %v606_v59, %v477_v8  ;;  %v642_v58 = vld [vmem:[#allocation6 + $0x58] sm:$0xff] }
 0x14e   : > { %v523_v63 = vadd.f32 %v522_v61, %v478_v53  ;;  %v552_v0 = vadd.f32 %v551_v62, %v479_v54  ;;  %v641_v54 = vld [vmem:[#allocation6 + $0x50] sm:$0xff]  ;;  %v485_v62 = vld [vmem:[#allocation8 + $0x78] sm:$0xff] }
 0x14f   : > { %v621_v41 = vmax.f32 %v578_v20, 0.0  ;;  %v622_v42 = vmax.f32 %v607_v21, 0.0  ;;  %v484_v61 = vld [vmem:[#allocation8 + $0x70] sm:$0xff] }
 0x150   : > { %v623_v13 = vmax.f32 %v523_v63, 0.0  ;;  %v624_v15 = vmax.f32 %v552_v0, 0.0 }
 0x151   : > { %v653_v63 = vmul.f32 %v637_v47, %v621_v41  ;;  %v654_v0 = vmul.f32 %v638_v48, %v622_v42 }
 0x152   : > { %v655_v35 = vmul.f32 %v639_v14, %v623_v13  ;;  %v656_v36 = vmul.f32 %v640_v22, %v624_v15  ;;  %v645_v13 = vld [vmem:[#allocation6 + $0x70] sm:$0xff]  ;;  %v646_v14 = vld [vmem:[#allocation6 + $0x78] sm:$0xff] }
 0x153   : > { %v681_v15 = vadd.f32 %v653_v63, %v649_v1 }
 0x154   : > { %v580_v28 = vpop.f32.mrf.mxu2  ;;  %v609_v29 = vpop.f32.mrf.mxu3  ;;  %v664_v56 = vadd.f32 %v663_v45, %v655_v35  ;;  %v673_v57 = vadd.f32 %v672_v46, %v656_v36 }
 0x155   : > { %v581_v31 = vadd.f32 %v580_v28, %v480_v16  ;;  %v610_v32 = vadd.f32 %v609_v29, %v481_v17  ;;  %v525_v33 = vpop.f32.mrf.mxu0  ;;  %v554_v34 = vpop.f32.mrf.mxu1  ;;  %v690_v16 = vadd.f32 %v654_v0, %v650_v2 }
 0x156   : > { %v526_v37 = vadd.f32 %v525_v33, %v482_v23  ;;  %v555_v38 = vadd.f32 %v554_v34, %v483_v24  ;;  %v703_v29 = vpop.permute.xlu1 %702 }
 0x157   : > { %v625_v53 = vmax.f32 %v581_v31, 0.0  ;;  %v626_v55 = vmax.f32 %v610_v32, 0.0  ;;  %v705_v36 = vperm.slane %v703_v29, 0 }
 0x158   : > { %v627_v49 = vmax.f32 %v526_v37, 0.0  ;;  %v628_v50 = vmax.f32 %v555_v38, 0.0 }
 0x159   : > { %v657_v7 = vmul.f32 %v641_v54, %v625_v53  ;;  %v658_v8 = vmul.f32 %v642_v58, %v626_v55 }
 0x15a   : > { %v659_v59 = vmul.f32 %v643_v43, %v627_v49  ;;  %v660_v60 = vmul.f32 %v644_v44, %v628_v50 }
 0x15b   : > { %v682_v21 = vadd.f32 %v681_v15, %v657_v7  ;;  %v691_v22 = vadd.f32 %v690_v16, %v658_v8 }
 0x15c   : > { %v665_v3 = vadd.f32 %v664_v56, %v659_v59  ;;  %v674_v4 = vadd.f32 %v673_v57, %v660_v60  ;;  %v583_v5 = vpop.f32.mrf.mxu2  ;;  %v612_v6 = vpop.f32.mrf.mxu3 }
 0x15d   : > { %v584_v9 = vadd.f32 %v583_v5, %v484_v61  ;;  %v613_v10 = vadd.f32 %v612_v6, %v485_v62 }
 0x15e   : > { %v666_v11 = vrot.slane %v665_v3, 4  ;;  %v675_v12 = vrot.slane %v674_v4, 4 }
 0x15f   : > { %v629_v17 = vmax.f32 %v584_v9, 0.0  ;;  %v630_v18 = vmax.f32 %v613_v10, 0.0 }
 0x160   : > { %v667_v19 = vadd.f32 %v666_v11, %v665_v3  ;;  %v676_v20 = vadd.f32 %v675_v12, %v674_v4 }
 0x161   : > { %v661_v23 = vmul.f32 %v645_v13, %v629_v17  ;;  %v662_v24 = vmul.f32 %v646_v14, %v630_v18  ;;  %v800_v17 = vlaneseq }
 0x162   : > { %v668_v25 = vrot.slane %v667_v19, 2  ;;  %v677_v26 = vrot.slane %v676_v20, 2 }
 0x163   : > { %v683_v27 = vadd.f32 %v682_v21, %v661_v23  ;;  %v692_v28 = vadd.f32 %v691_v22, %v662_v24 }
 0x164   : > { %v669_v30 = vadd.f32 %v668_v25, %v667_v19  ;;  %v678_v31 = vadd.f32 %v677_v26, %v676_v20 }
 0x165   : > { %v684_v32 = vrot.slane %v683_v27, 4  ;;  %v693_v33 = vrot.slane %v692_v28, 4 }
 0x166   : > { %v670_v34 = vrot.slane %v669_v30, 1  ;;  %v679_v35 = vrot.slane %v678_v31, 1 }
 0x167   : > { %v685_v37 = vadd.f32 %v684_v32, %v683_v27  ;;  %v694_v38 = vadd.f32 %v693_v33, %v692_v28 }
 0x168   : > { %v671_v39 = vadd.f32 %v670_v34, %v669_v30  ;;  %v680_v40 = vadd.f32 %v679_v35, %v678_v31 }
 0x169   : > { %v686_v41 = vrot.slane %v685_v37, 2  ;;  %v695_v42 = vrot.slane %v694_v38, 2 }
 0x16a   : > { %v706_v43 = vadd.f32 %v705_v36, %v671_v39  ;;  %v707_v44 = vadd.f32 %v705_v36, %v680_v40 }
 0x16b   : > { %v687_v45 = vadd.f32 %v686_v41, %v685_v37  ;;  %v696_v46 = vadd.f32 %v695_v42, %v694_v38 }
 0x16c   : > { %v710_v47 = vsub.f32 0.0, %v706_v43  ;;  %v711_v48 = vsub.f32 0.0, %v707_v44 }
 0x16d   : > { %v688_v49 = vrot.slane %v687_v45, 1  ;;  %v697_v50 = vrot.slane %v696_v46, 1 }
 0x16e   : > { %v714_v51 = vmul.f32 1.442695, %v710_v47  ;;  %v716_v52 = vmul.f32 1.442695, %v711_v48 }
 0x16f   : > { %v689_v53 = vadd.f32 %v688_v49, %v687_v45  ;;  %v698_v54 = vadd.f32 %v697_v50, %v696_v46 }
 0x170   : > { %1023 = vpow2.f32 %v714_v51 }
 0x171   : > { %v708_v55 = vadd.f32 %v705_v36, %v689_v53  ;;  %v709_v56 = vadd.f32 %v705_v36, %v698_v54  ;;  %1025 = vpow2.f32 %v716_v52 }
 0x173   : > { %v712_v57 = vsub.f32 0.0, %v708_v55  ;;  %v713_v58 = vsub.f32 0.0, %v709_v56 }
 0x175   : > { %v718_v59 = vmul.f32 1.442695, %v712_v57  ;;  %v720_v60 = vmul.f32 1.442695, %v713_v58 }
 0x176   : > { %v1024_v61 = vpop.eup %1023 }
 0x177   : > { %v1026_v62 = vpop.eup %1025  ;;  %1027 = vpow2.f32 %v718_v59  ;;  %v1421_v63 = vadd.f32 1.0, %v1024_v61 }
 0x178   : > { %1029 = vpow2.f32 %v720_v60  ;;  %v723_v0 = vadd.f32 1.0, %v1026_v62 }
 0x179   : > { %1031 = vrcp.f32 %v1421_v63  ;;  %vm731_vm3 = vweird.f32 %v1421_v63  ;;  %v737_v34 = vand.u32 2147483648, %v1421_v63  ;;  %v735_v37 = vand.u32 2147483647, %v1421_v63 }
 0x17a   : > { %1033 = vrcp.f32 %v723_v0  ;;  %v752_v12 = vand.u32 2147483648, %v723_v0  ;;  %vm746_vm2 = vweird.f32 %v723_v0  ;;  %v750_v20 = vand.u32 2147483647, %v723_v0 }
 0x17b   : > { %v738_v46 = vor.u32 1.1754944e-38, %v737_v34 }
 0x17c   : > { %v753_v23 = vor.u32 1.1754944e-38, %v752_v12  ;;  %vm751_vm8 = vcmp.eq.f32.partialorder %v750_v20, 8.507059e+37 }
 0x17d   : > { %v1028_v1 = vpop.eup %1027 }
 0x17e   : > { %v1030_v2 = vpop.eup %1029  ;;  %v724_v3 = vadd.f32 1.0, %v1028_v1 }
 0x17f   : > { %v1424_v4 = vpop.eup %1031  ;;  %v725_v5 = vadd.f32 1.0, %v1030_v2 }
 0x180   : > { %v1034_v6 = vpop.eup %1033  ;;  %v727_v7 = vmul.f32 %v1424_v4, %v1421_v63  ;;  %1035 = vrcp.f32 %v724_v3  ;;  %vm732_vm4 = vweird.f32 %v1424_v4  ;;  %v765_v26 = vand.u32 2147483647, %v724_v3 }
 0x181   : > { %v742_v8 = vmul.f32 %v1034_v6, %v723_v0  ;;  %1037 = vrcp.f32 %v725_v5  ;;  %vm747_vm1 = vweird.f32 %v1034_v6  ;;  %v767_v27 = vand.u32 2147483648, %v724_v3  ;;  %vm1444_vm10 = vmor %vm731_vm3, %vm732_vm4 }
 0x182   : > { %v728_v10 = vsub.f32 1.0, %v727_v7  ;;  %vm1431_vm5 = vmor %vm746_vm2, %vm747_vm1  ;;  %v780_v29 = vand.u32 2147483647, %v725_v5  ;;  %v782_v30 = vand.u32 2147483648, %v725_v5  ;;  %vm761_vm11 = vweird.f32 %v724_v3 }
 0x183   : > { %v743_v9 = vsub.f32 1.0, %v742_v8  ;;  %v768_v38 = vor.u32 1.1754944e-38, %v767_v27  ;;  %vm776_vm13 = vweird.f32 %v725_v5  ;;  %vm766_vm14 = vcmp.eq.f32.partialorder %v765_v26, 8.507059e+37 }
 0x184   : > { %v729_v19 = vmul.f32 %v1424_v4, %v728_v10  ;;  %vm781_vm0 = vcmp.eq.f32.partialorder %v780_v29, 8.507059e+37  ;;  %v783_v41 = vor.u32 1.1754944e-38, %v782_v30  ;;  %vm795_vm1 = vcmask 1042434  }
 0x185   : > { %v744_v11 = vmul.f32 %v1034_v6, %v743_v9  ;;  %vm736_vm2 = vcmp.eq.f32.partialorder %v735_v37, 8.507059e+37  ;;  %vm797_vm3 = vcmask 1041408   ;;  %vm802_vm4 = vcmp.lt.s32.totalorder %v800_v17, 512 }
 0x186   : > { %v1036_v13 = vpop.eup %1035  ;;  %v730_v31 = vadd.f32 %v1424_v4, %v729_v19 }
 0x187   : > { %v1038_v14 = vpop.eup %1037  ;;  %v757_v15 = vmul.f32 %v1036_v13, %v724_v3  ;;  %v745_v16 = vadd.f32 %v1034_v6, %v744_v11  ;;  %vm762_vm7 = vweird.f32 %v1036_v13 }
 0x188   : > { %v772_v18 = vmul.f32 %v1038_v14, %v725_v5  ;;  %vm777_vm9 = vweird.f32 %v1038_v14  ;;  %vm763_vm12 = vmor %vm761_vm11, %vm762_vm7  ;;  %v734_v42 = vsel %vm1444_vm10, %v1424_v4, %v730_v31 }
 0x189   : > { %v758_v21 = vsub.f32 1.0, %v757_v15  ;;  %v749_v25 = vsel %vm1431_vm5, %v1034_v6, %v745_v16  ;;  %vm778_vm15 = vmor %vm776_vm13, %vm777_vm9  ;;  %v739_v50 = vsel %vm736_vm2, %v738_v46, %v734_v42 }
 0x18a   : > { %v773_v24 = vsub.f32 1.0, %v772_v18  ;;  %v754_v35 = vsel %vm751_vm8, %v753_v23, %v749_v25 }
 0x18b   : > { %v759_v28 = vmul.f32 %v1036_v13, %v758_v21  ;;  %v790_v45 = vrot.slane %v754_v35, 7 }
 0x18c   : > { %v774_v32 = vmul.f32 %v1038_v14, %v773_v24 }
 0x18d   : > { %v760_v36 = vadd.f32 %v1036_v13, %v759_v28  ;;  %v794_v51 = vsel %vm793_vm6, %v739_v50, %v790_v45 }
 0x18e   : > { %v775_v39 = vadd.f32 %v1038_v14, %v774_v32 }
 0x18f   : > { %v764_v40 = vsel %vm763_vm12, %v1036_v13, %v760_v36 }
 0x190   : > { %v769_v43 = vsel %vm766_vm14, %v768_v38, %v764_v40  ;;  %v779_v44 = vsel %vm778_vm15, %v1038_v14, %v775_v39 }
 0x191   : > { %v784_v47 = vsel %vm781_vm0, %v783_v41, %v779_v44  ;;  %v791_v48 = vrot.slane %v769_v43, 6 }
 0x192   : > { %v792_v49 = vrot.slane %v784_v47, 5 }
 0x194   : > { %v796_v52 = vsel %vm795_vm1, %v791_v48, %v792_v49 }
 0x195   : > { %v798_v53 = vsel %vm797_vm3, %v794_v51, %v796_v52 }
 0x196   : > { %804 = vst.msk [vmem:[%s331_s18] sm:$0xf] %vm802_vm4, %v798_v53 }
 0x197   : > { %1156 = shalt.err (!%p1153_p9)
}
 0x198   : > { %954 = dma.vmem_to_hbm [thread:$0]  (%p1320_p4), %s819_s19, 64, %s821_s6, %s806_s20  }
 0x199 PF: > { %s832_s30 = sand.u32 1, %s1187_s26   ;;  %p1508_p10 = scmp.ge.s32.totalorder %s1199_s29, 2 }
 0x19a   : > { %s833_s17 = scalar_lea.sflag [#allocation5], %s832_s30 }
 0x19b   : > { %p968_p13 = pnand %p1508_p10, %p1324_p6 }
 0x19d   : > { %p969_p11 = pneg %p968_p13 }
 0x19f   : > { %1182 = dma.done.wait (%p969_p11), %s833_s17, 64  }
 0x1a0   : > { %1184 = vsyncadd (%p969_p11), %s833_s17, 4294967232  ;;  %p23_p0 = scmp.ge.s32.totalorder %s1294_s21, 4   ;;  %s1509_s26 = smov %s1191_s27 }
 0x1a1   : > { %s1510_s27 = smov %s1195_s28  ;;  %s1511_s28 = smov %s1305_s24 }
 0x1a2   : > { %s1512_s29 = smov %s1294_s21  ;;  %25 = sbr.rel (!%p23_p0) target bundleno = 9 (0x9), region = 101 }
 0x1a7   :  { %839 = vsyncpa [#allocation4], 1 }
 0x1a8   :  { %841 = vsyncpa [#allocation4 + $0x1], 1 }
 0x1a9   :  { %842 = vsyncpa [#allocation7], 1 }
 0x1aa   :  { %843 = vsyncpa [#allocation5], 1 }
 0x1ab   :  { %845 = vsyncpa [#allocation5 + $0x1], 1 }

// kernel: tpu_custom_call.1
= control target key start
LH: loop header
LB: loop body
LE: loop exit
PB: predicated region body
PF: predicated region fallthrough
CT: control target
= control target key end

     0   :  { %s3114_s0 = inlined_call_operand.hbm [shape: f32[3,1024], index: 0, kind: input, shape index: {}]   ;;  %s3115_s1 = inlined_call_operand.vmem [shape: f32[16,3], index: 1, kind: input, shape index: {}]   ;;  %s3116_s2 = inlined_call_operand.vmem [shape: f32[32,16], index: 2, kind: input, shape index: {}]   ;;  %s3117_s3 = inlined_call_operand.hbm [shape: f32[32,512], index: 3, kind: input, shape index: {}]   ;;  %s3118_s4 = inlined_call_operand.vmem [shape: f32[16,512], index: 4, kind: input, shape index: {}]   ;;  %s3119_s5 = inlined_call_operand.hbm [shape: f32[32,512], index: 5, kind: input, shape index: {}]   ;;  %s3120_s6 = inlined_call_operand.<no memory space> [shape: f32[1,1], index: 6, kind: input, shape index: {}]   ;;  %s3121_s7 = inlined_call_operand.hbm [shape: f32[1,1024], index: 7, kind: output, shape index: {}]  }
   0x1   :  { %3128 = sst [smem:[#allocation18_spill]] %s3117_s3  ;;  %v12_v0 = vstv %s3120_s6 }
   0x2   :  { %13 = vst [vmem:[#allocation2] sm:$0x1] %v12_v0 }
   0x3   :  { %14 = vsyncpa [#allocation4], 0 }
   0x4   :  { %16 = vsyncpa [#allocation4 + $0x1], 0 }
   0x5   :  { %17 = vsyncpa [#allocation7], 0 }
   0x6   :  { %18 = vsyncpa [#allocation5], 0 }
   0x7   :  { %20 = vsyncpa [#allocation5 + $0x1], 0  ;;  %s2009_s26 = smov 0   ;;  %s2011_s27 = smov 0  }
   0x8   :  { %s2013_s28 = smov 0   ;;  %s2015_s29 = smov 0  }
   0x9 LB: > { %s3129_s3 = sld [smem:[#allocation18_spill]]  ;;  %s2033_s9 = sadd.s32 4294967295, %s1944_s29   ;;  %s1944_s29 = sphi %s2015_s29, %s3158_s29   ;;  %s1940_s28 = sphi %s2013_s28, %s3157_s28   ;;  %s1936_s27 = sphi %s2011_s27, %s3156_s27   ;;  %s1932_s26 = sphi %s2009_s26, %s3155_s26  }
   0xa   : > { %p1618_p0 = scmp.ge.s32.totalorder %s1944_s29, 1  ;;  %p47_p1 = scmp.eq.s32.totalorder %s2033_s9, 0 }
   0xb   : > { %p209_p2 = scmp.lt.s32.totalorder %s1944_s29, 3  ;;  %s1946_s11 = smov [#allocation6]  }
   0xc   : > { %s228_s12 = sshll.u32 %s1946_s11, 4  ;;  %s243_s15 = sshll.u32 %s3119_s5, 4  ;;  %s229_s12 = int_to_ptr.vmem [resolvable:$true] %s228_s12  ;;  %s244_s15 = int_to_ptr.hbm [resolvable:$true] %s243_s15 }
   0xd   : > { %p2038_p3 = pnand %p1618_p0, %p209_p2  ;;  %s1947_s16 = smov [#allocation8]  }
   0xe   : > { %s245_s17 = sshll.u32 %s1947_s16, 4  ;;  %s1948_s18 = smov 512   ;;  %s246_s17 = int_to_ptr.vmem [resolvable:$true] %s245_s17 }
   0xf   : > { %s226_s8 = sshll.u32 %s3129_s3, 4  ;;  %p1647_p4 = pneg %p2038_p3  ;;  %s227_s8 = int_to_ptr.hbm [resolvable:$true] %s226_s8 }
  0x10   : > { %s1949_s19 = smov 32   ;;  %s1617_s20 = sadd.s32 4294967294, %s1944_s29  }
  0x11   : > { %p1648_p6 = pnand %p1647_p4, %p47_p1  ;;  %s2052_s21 = sadd.s32 1, %s1944_s29  }
  0x12   : > { %s30_s22 = ssub.s32 %s1944_s29, %s2052_s21  ;;  %s33_s23 = sadd.s32 1, %s1940_s28 }
  0x13   : > { %1650 = dma.hbm_to_vmem [thread:$0]  (!%p1648_p6), %s227_s8, 2048, %s229_s12, [#allocation7], %s1948_s18, %s1948_s18, %s1949_s19  }
  0x14   : > { %1653 = dma.hbm_to_vmem [thread:$0]  (!%p1648_p6), %s244_s15, 2048, %s246_s17, [#allocation7], %s1948_s18, %s1948_s18, %s1949_s19  }
  0x15   : > { %p31_p7 = scmp.eq.s32.totalorder %s30_s22, 0  ;;  %p40_p8 = scmp.ne.s32.totalorder %s1940_s28, %s1936_s27 }
  0x16   : > { %p41_p9 = scmp.eq.s32.totalorder %s1944_s29, 0  ;;  %p46_p10 = scmp.ne.s32.totalorder %s1936_s27, %s1932_s26 }
  0x17   : > { %s2063_s24 = scalar_select %p31_p7, %s1940_s28, %s33_s23  }
  0x18   : > { %p2065_p11 = por %p41_p9, %p40_p8  ;;  %p2071_p12 = por %p47_p1, %p46_p10 }
  0x19   : > { %p196_p13 = scmp.eq.s32.totalorder %s2033_s9, 1  ;;  %p202_p0 = scmp.eq.s32.totalorder %s1617_s20, 1 }
  0x1a   : > { %p1664_p2 = scmp.lt.s32.totalorder %s1944_s29, 2  ;;  %s262_s30 = sand.u32 1, %s1940_s28  }
  0x1b   : > { %p2078_p4 = por %p196_p13, %p40_p8  ;;  %p2082_p6 = por %p202_p0, %p46_p10 }
  0x1c   : > { %s1622_s12 = sshll.u32 %s262_s30, 4  ;;  %s1634_s13 = sshll.u32 %s1944_s29, 4 }
  0x1d   : > { %s271_s16 = scalar_lea.hbm %s3114_s0, %s1634_s13  ;;  %s266_s17 = scalar_lea.vmem [#allocation3], %s1622_s12 }
  0x1e   : > { %s275_s18 = sshll.u32 %s266_s17, 4  ;;  %s273_s19 = sshll.u32 %s271_s16, 4  ;;  %s276_s18 = int_to_ptr.vmem [resolvable:$true] %s275_s18  ;;  %s274_s19 = int_to_ptr.hbm [resolvable:$true] %s273_s19 }
  0x1f   : > { %p2092_p7 = pnand %p1664_p2, %p2065_p11  ;;  %s263_s22 = scalar_lea.sflag [#allocation4], %s262_s30 }
  0x20   : > { %s1844_s23 = sshra.s32 %s274_s19, 4  ;;  %s1851_s14 = scalar_lea.hbm %s3114_s0, 32  ;;  %s1845_s23 = int_to_ptr.hbm [resolvable:$true] %s1844_s23 }
  0x21   : > { %s1846_s3 = scalar_lea.hbm %s1845_s23, 16  ;;  %p1848_p9 = pneg %p2092_p7 }
  0x22   : > { %p1847_p8 = scmp.ne.s32.totalorder %s1845_s23, %s1846_s3  ;;  %p1852_p11 = scmp.lt.s32.totalorder %s1845_s23, %s3114_s0 }
  0x23   : > { %p1853_p0 = scmp.lt.s32.totalorder %s1851_s14, %s1846_s3 }
  0x24   : > { %p1849_p10 = pnand %p1848_p9, %p1847_p8 }
  0x25   : > { %p1854_p2 = por %p1853_p0, %p1852_p11 }
  0x26   : > { %p1850_p13 = pneg %p1849_p10 }
  0x28   : > { %p1855_p5 = pnand %p1854_p2, %p1850_p13 }
  0x2a   : > { %1858 = shalt.err (!%p1855_p5)
}
  0x2b   : > { %1657 = dma.hbm_to_vmem [thread:$0]  (!%p2092_p7), %s274_s19, 256, %s276_s18, %s263_s22  }
  0x2c   : > { %284 = sbr.rel (%p2038_p3) target bundleno = 468 (0x1d4), region = 48 }
  0x31   : > { %s2109_s30 = sand.u32 1, %s1936_s27  }
  0x32   : > { %s1626_s16 = sshll.u32 %s2109_s30, 4  ;;  %s287_s17 = scalar_lea.sflag [#allocation4], %s2109_s30 }
  0x33   : > { %s2113_s12 = scalar_lea.vmem [#allocation3], %s1626_s16 }
  0x34   : > { %1919 = dma.done.wait (%p2071_p12), %s287_s17, 256  }
  0x35   : > { %1921 = vsyncadd (%p2071_p12), %s287_s17, 4294967040 }
  0x36   : > { %1923 = dma.done.wait (%p47_p1), [#allocation7], 4096  }
  0x37   : > { %1925 = vsyncadd (%p47_p1), [#allocation7], 4294963200  ;;  %v1950_v1 = vmov 2   ;;  %v1951_v2 = vmov 1   ;;  %v1952_v3 = vmov 0   ;;  %v336_v4 = vld [vmem:[%s3115_s1] sm:$0xff] }
  0x38   : > { %1722 = vset.pattern.permute.xlu2 %v1950_v1  ;;  %1721 = vset.pattern.permute.xlu1 %v1951_v2  ;;  %v337_v5 = vld [vmem:[%s3115_s1 + $0x8] sm:$0xff]  ;;  %v2133_v6 = vld [vmem:[%s3116_s2] sm:$0xff]  ;;  %v2138_v7 = vld [vmem:[%s3116_s2 + $0x10] sm:$0xff]  ;;  %v1953_v10 = vmov 4   ;;  %v1954_v11 = vmov 3   ;;  %v1955_v12 = vmov 5  }
  0x39   : > { %1720 = vset.pattern.permute.xlu0 %v1952_v3  ;;  %407 = vperm.xlu2 %1722, %v336_v4   ;;  %v2143_v8 = vld [vmem:[%s3116_s2 + $0x8] sm:$0xff]  ;;  %v2153_v9 = vld [vmem:[%s3116_s2 + $0x18] sm:$0xff]  ;;  %v1956_v13 = vmov 6   ;;  %v1957_v14 = vmov 7   ;;  %v1958_v15 = vmov 9   ;;  %v3126_v17 = vmov 10  }
  0x3a   : > { %371 = vperm.xlu1 %1721, %v336_v4   ;;  %340 = vperm.xlu0 %1720, %v336_v4   ;;  %v334_v19 = vld [vmem:[%s2113_s12] sm:$0x77]  ;;  %v335_v20 = vld [vmem:[%s2113_s12 + $0x8] sm:$0x77]  ;;  %v3124_v25 = vmov 11   ;;  %v3123_v57 = vmov 13  }
  0x3b   : > { %v414_v21 = vperm.slane %v334_v19, 2  ;;  %v415_v22 = vperm.slane %v334_v19, 6  ;;  %v416_v23 = vperm.slane %v335_v20, 2  ;;  %v417_v24 = vperm.slane %v335_v20, 6  ;;  %v442_v63 = vld [vmem:[%s3118_s4] sm:$0xff]  ;;  %s1629_s6 = sshll.u32 %s2109_s30, 2 }
  0x3c   : > { %v378_v27 = vperm.slane %v334_v19, 1  ;;  %v379_v28 = vperm.slane %v334_v19, 5  ;;  %v380_v29 = vperm.slane %v335_v20, 1  ;;  %v381_v30 = vperm.slane %v335_v20, 5  ;;  %s1631_s18 = sshll.u32 %s2033_s9, 2  ;;  %s331_s22 = scalar_lea.vmem [#allocation9], %s1629_s6 }
  0x3d   : > { %v350_v31 = vperm.slane %v334_v19, 0  ;;  %v351_v32 = vperm.slane %v334_v19, 4  ;;  %v352_v33 = vperm.slane %v335_v20, 0  ;;  %v353_v34 = vperm.slane %v335_v20, 4  ;;  %s1523_s20 = scalar_lea.hbm %s3121_s7, %s1631_s18  ;;  %s1525_s23 = sshll.u32 %s331_s22, 4  ;;  %s1526_s23 = int_to_ptr.vmem [resolvable:$true] %s1525_s23 }
  0x3e   : > { %v422_v35 = vperm.slane %v414_v21, 2  ;;  %v423_v36 = vperm.slane %v415_v22, 2  ;;  %v424_v37 = vperm.slane %v416_v23, 2  ;;  %v425_v38 = vperm.slane %v417_v24, 2  ;;  %s1527_s13 = sshll.u32 %s1523_s20, 4  ;;  %s1513_s14 = scalar_lea.sflag [#allocation5], %s2109_s30  ;;  %s1528_s13 = int_to_ptr.hbm [resolvable:$true] %s1527_s13 }
  0x3f   : > { %v386_v39 = vperm.slane %v378_v27, 1  ;;  %v387_v40 = vperm.slane %v379_v28, 1  ;;  %v388_v41 = vperm.slane %v380_v29, 1  ;;  %v389_v42 = vperm.slane %v381_v30, 1  ;;  %s1888_s15 = sshra.s32 %s1528_s13, 4  ;;  %s1894_s12 = scalar_lea.hbm %s3121_s7, 8  ;;  %s1889_s15 = int_to_ptr.hbm [resolvable:$true] %s1888_s15 }
  0x40   : > { %v358_v43 = vperm.slane %v350_v31, 0  ;;  %v359_v44 = vperm.slane %v351_v32, 0  ;;  %v360_v45 = vperm.slane %v352_v33, 0  ;;  %v2194_v46 = vperm.slane %v353_v34, 0  ;;  %s1890_s25 = scalar_lea.hbm %s1889_s15, 4  ;;  %p1895_p12 = scmp.lt.s32.totalorder %s1889_s15, %s3121_s7 }
  0x41   : > { %411 = vperm.xlu2 %1722, %v337_v5   ;;  %v1962_v29 = vmov 8   ;;  %vm1500_vm2 = vcmask 1040384   ;;  %p1891_p1 = scmp.ne.s32.totalorder %s1889_s15, %s1890_s25  ;;  %p1896_p7 = scmp.lt.s32.totalorder %s1894_s12, %s1890_s25 }
  0x42   : > { %375 = vperm.xlu1 %1721, %v337_v5   ;;  %345 = vperm.xlu0 %1720, %v337_v5   ;;  %v443_v5 = vld [vmem:[%s3118_s4 + $0x8] sm:$0xff] }
  0x43   : > { %p1892_p3 = pnand %p1891_p1, %p2078_p4  ;;  %p1897_p8 = por %p1896_p7, %p1895_p12 }
  0x45   : > { %p1893_p5 = pneg %p1892_p3 }
  0x47   : > { %p1898_p9 = pnand %p1897_p8, %p1893_p5 }
  0x49   : > { %1724 = vset.pattern.permute.xlu2 %v1952_v3 }
  0x4a   : > { %1723 = vset.pattern.permute.xlu1 %v1952_v3  ;;  %472 = vperm.xlu0 %1720, %v2133_v6  }
  0x4b   : > { %482 = vperm.xlu2 %1724, %v2138_v7   ;;  %477 = vperm.xlu1 %1723, %v2143_v8  }
  0x52   : > { %487 = vperm.xlu0 %1720, %v2153_v9  }
  0x53   : > { %1726 = vset.pattern.permute.xlu2 %v1951_v2  ;;  %1725 = vset.pattern.permute.xlu1 %v1951_v2 }
  0x54   : > { %515 = vperm.xlu2 %1726, %v2143_v8   ;;  %511 = vperm.xlu1 %1725, %v2133_v6  }
  0x5a   : > { %1727 = vset.pattern.permute.xlu0 %v1951_v2 }
  0x5b   : > { %519 = vperm.xlu0 %1727, %v2138_v7  }
  0x5c   : > { %1728 = vset.pattern.permute.xlu2 %v1950_v1  ;;  %523 = vperm.xlu1 %1725, %v2153_v9  }
  0x5d   : > { %563 = vperm.xlu2 %1728, %v2133_v6  }
  0x63   : > { %1730 = vset.pattern.permute.xlu0 %v1950_v1 }
  0x64   : > { %1729 = vset.pattern.permute.xlu1 %v1950_v1  ;;  %575 = vperm.xlu0 %1730, %v2153_v9  }
  0x65   : > { %571 = vperm.xlu2 %1728, %v2138_v7   ;;  %567 = vperm.xlu1 %1729, %v2143_v8  }
  0x6c   : > { %1733 = vset.pattern.permute.xlu0 %v1953_v10 }
  0x6d   : > { %1732 = vset.pattern.permute.xlu2 %v1954_v11  ;;  %1731 = vset.pattern.permute.xlu1 %v1954_v11  ;;  %v445_v11 = vld [vmem:[%s3118_s4 + $0x18] sm:$0xff] }
  0x6e   : > { %667 = vperm.xlu0 %1733, %v2133_v6   ;;  %619 = vperm.xlu2 %1732, %v2143_v8  }
  0x6f   : > { %615 = vperm.xlu1 %1731, %v2133_v6  }
  0x76   : > { %1737 = vset.pattern.permute.xlu0 %v1955_v12  ;;  %627 = vperm.xlu2 %1732, %v2153_v9  }
  0x77   : > { %623 = vperm.xlu1 %1731, %v2138_v7   ;;  %723 = vperm.xlu0 %1737, %v2143_v8  }
  0x7e   : > { %1735 = vset.pattern.permute.xlu2 %v1953_v10 }
  0x7f   : > { %1734 = vset.pattern.permute.xlu1 %v1953_v10  ;;  %1741 = vset.pattern.permute.xlu0 %v1956_v13  ;;  %v444_v10 = vld [vmem:[%s3118_s4 + $0x10] sm:$0xff] }
  0x80   : > { %675 = vperm.xlu2 %1735, %v2138_v7   ;;  %671 = vperm.xlu1 %1734, %v2143_v8  }
  0x81   : > { %779 = vperm.xlu0 %1741, %v2138_v7  }
  0x88   : > { %1736 = vset.pattern.permute.xlu2 %v1955_v12  ;;  %679 = vperm.xlu1 %1734, %v2153_v9  }
  0x89   : > { %1744 = vset.pattern.permute.xlu0 %v1957_v14  ;;  %719 = vperm.xlu2 %1736, %v2133_v6  }
  0x8a   : > { %835 = vperm.xlu0 %1744, %v2153_v9  }
  0x90   : > { %1738 = vset.pattern.permute.xlu1 %v1955_v12 }
  0x91   : > { %731 = vperm.xlu2 %1736, %v2153_v9   ;;  %727 = vperm.xlu1 %1738, %v2138_v7  }
  0x92   : > { %1747 = vset.pattern.permute.xlu0 %v1958_v15 }
  0x93   : > { %927 = vperm.xlu0 %1747, %v2133_v6   ;;  %v408_v16 = vpop.permute.xlu2 %407 }
  0x94   : > { %v426_v47 = vmul.f32 %v422_v35, %v408_v16  ;;  %v427_v48 = vmul.f32 %v423_v36, %v408_v16  ;;  %v428_v49 = vmul.f32 %v424_v37, %v408_v16  ;;  %v429_v50 = vmul.f32 %v425_v38, %v408_v16 }
  0x99   : > { %1740 = vset.pattern.permute.xlu2 %v1956_v13  ;;  %1739 = vset.pattern.permute.xlu1 %v1956_v13 }
  0x9a   : > { %775 = vperm.xlu2 %1740, %v2143_v8   ;;  %771 = vperm.xlu1 %1739, %v2133_v6  }
  0x9b   : > { %1751 = vset.pattern.permute.xlu0 %v3126_v17  ;;  %v2183_v18 = vpop.permute.xlu2 %411 }
  0x9c   : > { %983 = vperm.xlu0 %1751, %v2143_v8   ;;  %v430_v19 = vmul.f32 %v422_v35, %v2183_v18  ;;  %v431_v20 = vmul.f32 %v423_v36, %v2183_v18  ;;  %v432_v21 = vmul.f32 %v424_v37, %v2183_v18  ;;  %v433_v22 = vmul.f32 %v425_v38, %v2183_v18 }
  0xa2   : > { %1742 = vset.pattern.permute.xlu2 %v1957_v14  ;;  %783 = vperm.xlu1 %1739, %v2153_v9  }
  0xa3   : > { %823 = vperm.xlu2 %1742, %v2133_v6  }
  0xa4   : > { %1755 = vset.pattern.permute.xlu0 %v3124_v25 }
  0xa5   : > { %v2191_v26 = vpop.permute.xlu2 %482  ;;  %1039 = vperm.xlu0 %1755, %v2138_v7  }
  0xaa   : > { %1743 = vset.pattern.permute.xlu1 %v1957_v14 }
  0xab   : > { %831 = vperm.xlu2 %1742, %v2138_v7   ;;  %827 = vperm.xlu1 %1743, %v2143_v8  }
  0xac   : > { %v372_v51 = vpop.permute.xlu1 %371  ;;  %v341_v56 = vpop.permute.xlu0 %340 }
  0xad   : > { %v390_v52 = vmul.f32 %v386_v39, %v372_v51  ;;  %v391_v53 = vmul.f32 %v387_v40, %v372_v51  ;;  %v392_v54 = vmul.f32 %v388_v41, %v372_v51  ;;  %v393_v55 = vmul.f32 %v389_v42, %v372_v51  ;;  %1759 = vset.pattern.permute.xlu0 %v3123_v57 }
  0xae   : > { %v362_v58 = vmul.f32 %v358_v43, %v341_v56  ;;  %v363_v59 = vmul.f32 %v359_v44, %v341_v56  ;;  %v364_v60 = vmul.f32 %v360_v45, %v341_v56  ;;  %v365_v61 = vmul.f32 %v2194_v46, %v341_v56  ;;  %v516_v62 = vpop.permute.xlu2 %515  ;;  %1135 = vperm.xlu0 %1759, %v2133_v6  }
  0xb0   : > { %v398_v0 = vadd.f32 %v390_v52, %v362_v58  ;;  %v399_v1 = vadd.f32 %v391_v53, %v363_v59  ;;  %v400_v2 = vadd.f32 %v392_v54, %v364_v60  ;;  %v401_v4 = vadd.f32 %v393_v55, %v365_v61 }
  0xb2   : > { %v434_v12 = vadd.f32 %v426_v47, %v398_v0  ;;  %v435_v13 = vadd.f32 %v427_v48, %v399_v1  ;;  %v436_v14 = vadd.f32 %v428_v49, %v400_v2  ;;  %v437_v16 = vadd.f32 %v429_v50, %v401_v4 }
  0xb3   : > { %1746 = vset.pattern.permute.xlu2 %v1962_v29  ;;  %1745 = vset.pattern.permute.xlu1 %v1962_v29  ;;  %v3122_v47 = vmov 14  }
  0xb4   : > { %v450_v23 = vadd.f32 %v442_v63, %v434_v12  ;;  %v451_v24 = vadd.f32 %v443_v5, %v435_v13  ;;  %v452_v27 = vadd.f32 %v444_v10, %v436_v14  ;;  %v453_v28 = vadd.f32 %v445_v11, %v437_v16  ;;  %v376_v30 = vpop.permute.xlu1 %375  ;;  %879 = vperm.xlu2 %1746, %v2143_v8   ;;  %v346_v34 = vpop.permute.xlu0 %345 }
  0xb5   : > { %v394_v31 = vmul.f32 %v386_v39, %v376_v30  ;;  %v395_v32 = vmul.f32 %v387_v40, %v376_v30  ;;  %v396_v33 = vmul.f32 %v388_v41, %v376_v30  ;;  %875 = vperm.xlu1 %1745, %v2133_v6   ;;  %v397_v38 = vmul.f32 %v389_v42, %v376_v30 }
  0xb6   : > { %v2218_v35 = vmax.f32 %v450_v23, 0.0  ;;  %v2220_v36 = vmax.f32 %v451_v24, 0.0  ;;  %v2222_v37 = vmax.f32 %v452_v27, 0.0  ;;  %v2224_v18 = vmax.f32 %v453_v28, 0.0  ;;  %1762 = vset.pattern.permute.xlu0 %v3122_v47 }
  0xb7   : > { %v366_v48 = vmul.f32 %v358_v43, %v346_v34  ;;  %v367_v49 = vmul.f32 %v359_v44, %v346_v34  ;;  %v368_v39 = vmul.f32 %v360_v45, %v346_v34  ;;  %v564_v40 = vpop.permute.xlu2 %563  ;;  %1191 = vperm.xlu0 %1762, %v2143_v8   ;;  %v369_v42 = vmul.f32 %v2194_v46, %v346_v34 }
  0xb8   : > { %v2229_v41 = vperm.slane %v2218_v35, 1  ;;  %v2232_v50 = vperm.slane %v2220_v36, 1  ;;  %v2235_v51 = vperm.slane %v2222_v37, 1  ;;  %v2238_v52 = vperm.slane %v2224_v18, 1 }
  0xb9   : > { %v402_v43 = vadd.f32 %v394_v31, %v366_v48  ;;  %v403_v44 = vadd.f32 %v395_v32, %v367_v49  ;;  %v404_v45 = vadd.f32 %v396_v33, %v368_v39  ;;  %v405_v58 = vadd.f32 %v397_v38, %v369_v42 }
  0xba   : > { %v534_v53 = vmul.f32 %v2229_v41, %v516_v62  ;;  %v535_v54 = vmul.f32 %v2232_v50, %v516_v62  ;;  %v536_v55 = vmul.f32 %v2235_v51, %v516_v62  ;;  %v537_v56 = vmul.f32 %v2238_v52, %v516_v62 }
  0xbb   : > { %v2246_v59 = vadd.f32 %v430_v19, %v402_v43  ;;  %v2248_v60 = vadd.f32 %v431_v20, %v403_v44  ;;  %v2250_v61 = vadd.f32 %v432_v21, %v404_v45  ;;  %v2253_v46 = vperm.slane %v2218_v35, 2 }
  0xbc   : > { %v2256_v63 = vperm.slane %v2220_v36, 2  ;;  %v2259_v0 = vperm.slane %v2222_v37, 2  ;;  %v2262_v1 = vperm.slane %v2224_v18, 2  ;;  %v2264_v62 = vadd.f32 %v433_v22, %v405_v58  ;;  %887 = vperm.xlu2 %1746, %v2153_v9   ;;  %v473_v2 = vpop.permute.xlu0 %472 }
  0xbd   : > { %3136 = vst [vmem:[#allocation13_spill] sm:$0xff] %v2246_v59  ;;  %v582_v4 = vmul.f32 %v2253_v46, %v564_v40  ;;  %883 = vperm.xlu1 %1745, %v2138_v7   ;;  %v478_v12 = vpop.permute.xlu1 %477  ;;  %v490_v13 = vperm.slane %v2218_v35, 0  ;;  %v491_v14 = vperm.slane %v2220_v36, 0  ;;  %v492_v16 = vperm.slane %v2222_v37, 0 }
  0xbe   : > { %3137 = vst [vmem:[#allocation14_spill] sm:$0xff] %v2248_v60  ;;  %v583_v5 = vmul.f32 %v2256_v63, %v564_v40  ;;  %v584_v10 = vmul.f32 %v2259_v0, %v564_v40  ;;  %v585_v11 = vmul.f32 %v2262_v1, %v564_v40  ;;  %v493_v19 = vperm.slane %v2224_v18, 0 }
  0xbf   : > { %3138 = vst [vmem:[#allocation15_spill] sm:$0xff] %v2250_v61  ;;  %1199 = vperm.xlu0 %1762, %v2153_v9   ;;  %v572_v20 = vpop.permute.xlu2 %571  ;;  %v494_v24 = vmul.f32 %v490_v13, %v473_v2  ;;  %v495_v27 = vmul.f32 %v491_v14, %v473_v2  ;;  %v496_v28 = vmul.f32 %v492_v16, %v473_v2  ;;  %v2301_v45 = vperm.slane %v2218_v35, 3 }
  0xc0   : > { %3139 = vst [vmem:[#allocation16_spill] sm:$0xff] %v2264_v62  ;;  %v2278_v21 = vmul.f32 %v2253_v46, %v572_v20  ;;  %v2281_v22 = vmul.f32 %v2256_v63, %v572_v20  ;;  %v2284_v23 = vmul.f32 %v2259_v0, %v572_v20  ;;  %v497_v29 = vmul.f32 %v493_v19, %v473_v2 }
  0xc1   : > { %v498_v30 = vmul.f32 %v490_v13, %v478_v12  ;;  %v499_v31 = vmul.f32 %v491_v14, %v478_v12  ;;  %v500_v32 = vmul.f32 %v492_v16, %v478_v12  ;;  %v501_v33 = vmul.f32 %v493_v19, %v478_v12 }
  0xc2   : > { %v2287_v34 = vmul.f32 %v2262_v1, %v572_v20  ;;  %v504_v58 = vmul.f32 %v492_v16, %v2191_v26 }
  0xc3   : > { %v2289_v38 = vadd.f32 %v534_v53, %v498_v30  ;;  %v2291_v48 = vadd.f32 %v535_v54, %v499_v31  ;;  %v2293_v49 = vadd.f32 %v536_v55, %v500_v32  ;;  %v2295_v39 = vadd.f32 %v537_v56, %v501_v33 }
  0xc4   : > { %1749 = vset.pattern.permute.xlu2 %v1958_v15  ;;  %v488_v40 = vpop.permute.xlu0 %487  ;;  %v502_v55 = vmul.f32 %v490_v13, %v2191_v26  ;;  %v503_v56 = vmul.f32 %v491_v14, %v2191_v26  ;;  %v2313_v31 = vperm.slane %v2220_v36, 3 }
  0xc5   : > { %1748 = vset.pattern.permute.xlu1 %v1958_v15  ;;  %935 = vperm.xlu2 %1749, %v2138_v7   ;;  %v506_v42 = vmul.f32 %v490_v13, %v488_v40  ;;  %v507_v43 = vmul.f32 %v491_v14, %v488_v40  ;;  %v508_v44 = vmul.f32 %v492_v16, %v488_v40  ;;  %v2316_v13 = vperm.slane %v2222_v37, 3 }
  0xc6   : > { %931 = vperm.xlu1 %1748, %v2143_v8   ;;  %v509_v53 = vmul.f32 %v493_v19, %v488_v40  ;;  %v512_v54 = vpop.permute.xlu1 %511  ;;  %v2319_v14 = vperm.slane %v2224_v18, 3  ;;  %v505_v16 = vmul.f32 %v493_v19, %v2191_v26 }
  0xc7   : > { %v530_v15 = vmul.f32 %v2229_v41, %v512_v54  ;;  %v531_v2 = vmul.f32 %v2232_v50, %v512_v54  ;;  %v532_v12 = vmul.f32 %v2235_v51, %v512_v54  ;;  %v533_v20 = vmul.f32 %v2238_v52, %v512_v54  ;;  %1765 = vset.pattern.permute.xlu0 %v1952_v3 }
  0xc8   : > { %v620_v30 = vpop.permute.xlu2 %619 }
  0xc9   : > { %v546_v32 = vadd.f32 %v530_v15, %v494_v24  ;;  %v547_v33 = vadd.f32 %v531_v2, %v495_v27  ;;  %v548_v40 = vadd.f32 %v532_v12, %v496_v28  ;;  %v549_v47 = vadd.f32 %v533_v20, %v497_v29 }
  0xca   : > { %v2323_v54 = vmul.f32 %v2301_v45, %v620_v30  ;;  %v2326_v3 = vmul.f32 %v2313_v31, %v620_v30  ;;  %v2329_v57 = vmul.f32 %v2316_v13, %v620_v30  ;;  %v2332_v25 = vmul.f32 %v2319_v14, %v620_v30 }
  0xcb   : > { %v2334_v17 = vadd.f32 %v582_v4, %v546_v32  ;;  %v2336_v62 = vadd.f32 %v583_v5, %v547_v33  ;;  %v2338_v26 = vadd.f32 %v584_v10, %v548_v40  ;;  %v2340_v19 = vadd.f32 %v585_v11, %v549_v47 }
  0xcc   : > { %v3141_v24 = vmov 10  }
  0xcd   : > { %3140 = vst [vmem:[#allocation17_spill] sm:$0xff] %v2340_v19  ;;  %1750 = vset.pattern.permute.xlu2 %v3141_v24  ;;  %v520_v27 = vpop.permute.xlu0 %519 }
  0xce   : > { %939 = vperm.xlu1 %1748, %v2153_v9   ;;  %979 = vperm.xlu2 %1750, %v2133_v6   ;;  %v538_v28 = vmul.f32 %v2229_v41, %v520_v27  ;;  %v539_v29 = vmul.f32 %v2232_v50, %v520_v27  ;;  %v540_v4 = vmul.f32 %v2235_v51, %v520_v27  ;;  %v524_v15 = vpop.permute.xlu1 %523 }
  0xcf   : > { %v541_v5 = vmul.f32 %v2238_v52, %v520_v27  ;;  %v542_v10 = vmul.f32 %v2229_v41, %v524_v15  ;;  %v543_v47 = vmul.f32 %v2232_v50, %v524_v15  ;;  %v544_v11 = vmul.f32 %v2235_v51, %v524_v15 }
  0xd0   : > { %v554_v2 = vadd.f32 %v538_v28, %v502_v55  ;;  %v555_v12 = vadd.f32 %v539_v29, %v503_v56  ;;  %v556_v20 = vadd.f32 %v540_v4, %v504_v58  ;;  %v545_v30 = vmul.f32 %v2238_v52, %v524_v15  ;;  %v628_v32 = vpop.permute.xlu2 %627 }
  0xd1   : > { %v557_v33 = vadd.f32 %v541_v5, %v505_v16  ;;  %v558_v40 = vadd.f32 %v542_v10, %v506_v42  ;;  %v559_v61 = vadd.f32 %v543_v47, %v507_v43  ;;  %v560_v60 = vadd.f32 %v544_v11, %v508_v44 }
  0xd2   : > { %v561_v59 = vadd.f32 %v545_v30, %v509_v53  ;;  %v646_v19 = vmul.f32 %v2301_v45, %v628_v32  ;;  %v647_v27 = vmul.f32 %v2313_v31, %v628_v32  ;;  %v648_v41 = vmul.f32 %v2316_v13, %v628_v32 }
  0xd3   : > { %v649_v50 = vmul.f32 %v2319_v14, %v628_v32  ;;  %v2358_v51 = vadd.f32 %v2278_v21, %v554_v2  ;;  %v2361_v55 = vadd.f32 %v2281_v22, %v555_v12  ;;  %v2364_v52 = vadd.f32 %v2284_v23, %v556_v20 }
  0xd4   : > { %v2367_v42 = vadd.f32 %v2287_v34, %v557_v33  ;;  %v2372_v44 = vperm.slane %v2218_v35, 4  ;;  %v2375_v21 = vperm.slane %v2220_v36, 4  ;;  %v2378_v22 = vperm.slane %v2222_v37, 4 }
  0xd5   : > { %v2381_v23 = vperm.slane %v2224_v18, 4  ;;  %v3142_v33 = vmov 11  }
  0xd6   : > { %1752 = vset.pattern.permute.xlu1 %v3141_v24  ;;  %991 = vperm.xlu2 %1750, %v2153_v9   ;;  %v576_v43 = vpop.permute.xlu0 %575 }
  0xd7   : > { %987 = vperm.xlu1 %1752, %v2138_v7   ;;  %v594_v34 = vmul.f32 %v2253_v46, %v576_v43  ;;  %v595_v53 = vmul.f32 %v2256_v63, %v576_v43  ;;  %v596_v56 = vmul.f32 %v2259_v0, %v576_v43  ;;  %v597_v58 = vmul.f32 %v2262_v1, %v576_v43  ;;  %v568_v16 = vpop.permute.xlu1 %567 }
  0xd8   : > { %v586_v24 = vmul.f32 %v2253_v46, %v568_v16  ;;  %v587_v28 = vmul.f32 %v2256_v63, %v568_v16  ;;  %v588_v29 = vmul.f32 %v2259_v0, %v568_v16  ;;  %v589_v4 = vmul.f32 %v2262_v1, %v568_v16 }
  0xd9   : > { %v610_v15 = vadd.f32 %v594_v34, %v558_v40  ;;  %v611_v5 = vadd.f32 %v595_v53, %v559_v61  ;;  %v612_v10 = vadd.f32 %v596_v56, %v560_v60  ;;  %v613_v47 = vadd.f32 %v597_v58, %v561_v59 }
  0xda   : > { %v602_v11 = vadd.f32 %v586_v24, %v2289_v38  ;;  %v603_v2 = vadd.f32 %v587_v28, %v2291_v48  ;;  %v604_v12 = vadd.f32 %v588_v29, %v2293_v49  ;;  %v605_v20 = vadd.f32 %v589_v4, %v2295_v39  ;;  %v676_v30 = vpop.permute.xlu2 %675  ;;  %v3143_v4 = vld [vmem:[#allocation17_spill] sm:$0xff] }
  0xdb   : > { %v2397_v46 = vmul.f32 %v2372_v44, %v676_v30  ;;  %v2400_v63 = vmul.f32 %v2375_v21, %v676_v30  ;;  %v2403_v0 = vmul.f32 %v2378_v22, %v676_v30  ;;  %v2406_v59 = vmul.f32 %v2381_v23, %v676_v30 }
  0xdc   : > { %v2409_v60 = vadd.f32 %v2323_v54, %v602_v11  ;;  %v2412_v61 = vadd.f32 %v2326_v3, %v603_v2  ;;  %v2415_v1 = vadd.f32 %v2329_v57, %v604_v12  ;;  %v2418_v38 = vadd.f32 %v2332_v25, %v605_v20 }
  0xdd   : > { %v2420_v48 = vadd.f32 %v646_v19, %v610_v15  ;;  %v2422_v49 = vadd.f32 %v647_v27, %v611_v5  ;;  %v2424_v39 = vadd.f32 %v648_v41, %v612_v10  ;;  %v2426_v32 = vadd.f32 %v649_v50, %v613_v47 }
  0xde   : > { %1754 = vset.pattern.permute.xlu2 %v3142_v33  ;;  %v2433_v25 = vperm.slane %v2218_v35, 5  ;;  %v2436_v3 = vperm.slane %v2220_v36, 5  ;;  %v2439_v19 = vperm.slane %v2222_v37, 5  ;;  %v2442_v40 = vperm.slane %v2224_v18, 5 }
  0xdf   : > { %1753 = vset.pattern.permute.xlu1 %v3142_v33  ;;  %1035 = vperm.xlu2 %1754, %v2143_v8  }
  0xe0   : > { %1031 = vperm.xlu1 %1753, %v2133_v6   ;;  %v668_v57 = vpop.permute.xlu0 %667 }
  0xe1   : > { %v616_v54 = vpop.permute.xlu1 %615  ;;  %v686_v34 = vmul.f32 %v2372_v44, %v668_v57  ;;  %v687_v53 = vmul.f32 %v2375_v21, %v668_v57  ;;  %v688_v56 = vmul.f32 %v2378_v22, %v668_v57  ;;  %v689_v58 = vmul.f32 %v2381_v23, %v668_v57 }
  0xe2   : > { %v634_v27 = vmul.f32 %v2301_v45, %v616_v54  ;;  %v635_v41 = vmul.f32 %v2313_v31, %v616_v54  ;;  %v636_v50 = vmul.f32 %v2316_v13, %v616_v54  ;;  %v637_v43 = vmul.f32 %v2319_v14, %v616_v54 }
  0xe3   : > { %v720_v16 = vpop.permute.xlu2 %719  ;;  %v1964_v57 = vmov 12  }
  0xe4   : > { %v650_v24 = vadd.f32 %v634_v27, %v2334_v17  ;;  %v651_v28 = vadd.f32 %v635_v41, %v2336_v62  ;;  %v652_v29 = vadd.f32 %v636_v50, %v2338_v26  ;;  %v653_v15 = vadd.f32 %v637_v43, %v3143_v4 }
  0xe5   : > { %v738_v5 = vmul.f32 %v2433_v25, %v720_v16  ;;  %v739_v10 = vmul.f32 %v2436_v3, %v720_v16  ;;  %v740_v47 = vmul.f32 %v2439_v19, %v720_v16  ;;  %v741_v11 = vmul.f32 %v2442_v40, %v720_v16 }
  0xe6   : > { %v702_v2 = vadd.f32 %v686_v34, %v650_v24  ;;  %v703_v12 = vadd.f32 %v687_v53, %v651_v28  ;;  %v704_v20 = vadd.f32 %v688_v56, %v652_v29  ;;  %v705_v30 = vadd.f32 %v689_v58, %v653_v15 }
  0xe7   : > { %1757 = vset.pattern.permute.xlu2 %v1964_v57 }
  0xe8   : > { %v2460_v17 = vadd.f32 %v738_v5, %v702_v2  ;;  %v2462_v62 = vadd.f32 %v739_v10, %v703_v12  ;;  %v2464_v26 = vadd.f32 %v740_v47, %v704_v20  ;;  %v2466_v54 = vadd.f32 %v741_v11, %v705_v30  ;;  %1756 = vset.pattern.permute.xlu1 %v1964_v57 }
  0xe9   : > { %1087 = vperm.xlu2 %1757, %v2143_v8   ;;  %1083 = vperm.xlu1 %1756, %v2133_v6   ;;  %v624_v27 = vpop.permute.xlu1 %623 }
  0xea   : > { %v642_v41 = vmul.f32 %v2301_v45, %v624_v27  ;;  %v643_v50 = vmul.f32 %v2313_v31, %v624_v27  ;;  %v644_v43 = vmul.f32 %v2316_v13, %v624_v27  ;;  %v645_v34 = vmul.f32 %v2319_v14, %v624_v27 }
  0xeb   : > { %v732_v53 = vpop.permute.xlu2 %731 }
  0xec   : > { %v658_v56 = vadd.f32 %v642_v41, %v2358_v51  ;;  %v659_v58 = vadd.f32 %v643_v50, %v2361_v55  ;;  %v660_v16 = vadd.f32 %v644_v43, %v2364_v52  ;;  %v661_v24 = vadd.f32 %v645_v34, %v2367_v42  ;;  %v724_v42 = vpop.permute.xlu0 %723 }
  0xed   : > { %v2479_v28 = vmul.f32 %v2433_v25, %v732_v53  ;;  %v2482_v45 = vmul.f32 %v2436_v3, %v732_v53  ;;  %v2485_v31 = vmul.f32 %v2439_v19, %v732_v53  ;;  %v2488_v13 = vmul.f32 %v2442_v40, %v732_v53 }
  0xee   : > { %v2491_v14 = vadd.f32 %v2397_v46, %v658_v56  ;;  %v2494_v51 = vadd.f32 %v2400_v63, %v659_v58  ;;  %v2497_v55 = vadd.f32 %v2403_v0, %v660_v16  ;;  %v2500_v52 = vadd.f32 %v2406_v59, %v661_v24 }
  0xef   : > { %v2506_v46 = vperm.slane %v2218_v35, 6  ;;  %v2509_v63 = vperm.slane %v2220_v36, 6  ;;  %v2512_v0 = vperm.slane %v2222_v37, 6  ;;  %v2515_v59 = vperm.slane %v2224_v18, 6 }
  0xf0   : > { %v742_v10 = vmul.f32 %v2433_v25, %v724_v42  ;;  %v743_v47 = vmul.f32 %v2436_v3, %v724_v42  ;;  %v744_v11 = vmul.f32 %v2439_v19, %v724_v42  ;;  %v745_v2 = vmul.f32 %v2442_v40, %v724_v42 }
  0xf1   : > { %1091 = vperm.xlu2 %1757, %v2138_v7   ;;  %1758 = vset.pattern.permute.xlu1 %v3142_v33 }
  0xf2   : > { %1043 = vperm.xlu1 %1758, %v2153_v9   ;;  %v672_v29 = vpop.permute.xlu1 %671 }
  0xf3   : > { %v690_v4 = vmul.f32 %v2372_v44, %v672_v29  ;;  %v691_v15 = vmul.f32 %v2375_v21, %v672_v29  ;;  %v692_v33 = vmul.f32 %v2378_v22, %v672_v29  ;;  %v693_v5 = vmul.f32 %v2381_v23, %v672_v29 }
  0xf4   : > { %v776_v12 = vpop.permute.xlu2 %775 }
  0xf5   : > { %v706_v20 = vadd.f32 %v690_v4, %v2409_v60  ;;  %v707_v30 = vadd.f32 %v691_v15, %v2412_v61  ;;  %v708_v57 = vadd.f32 %v692_v33, %v2415_v1  ;;  %v709_v27 = vadd.f32 %v693_v5, %v2418_v38 }
  0xf6   : > { %v794_v41 = vmul.f32 %v2506_v46, %v776_v12  ;;  %v795_v50 = vmul.f32 %v2509_v63, %v776_v12  ;;  %v796_v43 = vmul.f32 %v2512_v0, %v776_v12  ;;  %v797_v34 = vmul.f32 %v2515_v59, %v776_v12 }
  0xf7   : > { %v758_v53 = vadd.f32 %v742_v10, %v706_v20  ;;  %v759_v56 = vadd.f32 %v743_v47, %v707_v30  ;;  %v760_v58 = vadd.f32 %v744_v11, %v708_v57  ;;  %v761_v16 = vadd.f32 %v745_v2, %v709_v27 }
  0xf8   : > { %v3144_v38 = vmov 13   ;;  %v2549_v5 = vperm.slane %v2218_v35, 7  ;;  %v2552_v10 = vperm.slane %v2220_v36, 7  ;;  %v2555_v47 = vperm.slane %v2222_v37, 7  ;;  %v446_v35 = vld [vmem:[%s3118_s4 + $0x20] sm:$0xff] }
  0xf9   : > { %v2533_v24 = vadd.f32 %v794_v41, %v758_v53  ;;  %v2535_v60 = vadd.f32 %v795_v50, %v759_v56  ;;  %v2537_v61 = vadd.f32 %v796_v43, %v760_v58  ;;  %v2539_v1 = vadd.f32 %v797_v34, %v761_v16  ;;  %1095 = vperm.xlu2 %1757, %v2153_v9   ;;  %v780_v41 = vpop.permute.xlu0 %779  ;;  %v3146_v50 = vld [vmem:[#allocation13_spill] sm:$0xff]  ;;  %v3147_v34 = vld [vmem:[#allocation14_spill] sm:$0xff]  ;;  %v3149_v58 = vld [vmem:[#allocation16_spill] sm:$0xff] }
  0xfa   : > { %1760 = vset.pattern.permute.xlu1 %v3144_v38  ;;  %v680_v42 = vpop.permute.xlu1 %679  ;;  %v2558_v11 = vperm.slane %v2224_v18, 7  ;;  %v3145_v27 = vmov 14   ;;  %v454_v43 = vadd.f32 %v446_v35, %v3146_v50 }
  0xfb   : > { %1139 = vperm.xlu1 %1760, %v2143_v8   ;;  %v698_v29 = vmul.f32 %v2372_v44, %v680_v42  ;;  %v699_v4 = vmul.f32 %v2375_v21, %v680_v42  ;;  %v700_v15 = vmul.f32 %v2378_v22, %v680_v42  ;;  %v701_v33 = vmul.f32 %v2381_v23, %v680_v42 }
  0xfd   : > { %v714_v44 = vadd.f32 %v698_v29, %v2420_v48  ;;  %v715_v21 = vadd.f32 %v699_v4, %v2422_v49  ;;  %v716_v22 = vadd.f32 %v700_v15, %v2424_v39  ;;  %v717_v23 = vadd.f32 %v701_v33, %v2426_v32  ;;  %v824_v2 = vpop.permute.xlu2 %823  ;;  %v447_v49 = vld [vmem:[%s3118_s4 + $0x28] sm:$0xff]  ;;  %v448_v39 = vld [vmem:[%s3118_s4 + $0x30] sm:$0xff]  ;;  %v449_v32 = vld [vmem:[%s3118_s4 + $0x38] sm:$0xff] }
  0xfe   : > { %v2568_v36 = vmul.f32 %v2549_v5, %v824_v2  ;;  %v2571_v37 = vmul.f32 %v2552_v10, %v824_v2  ;;  %v2574_v18 = vmul.f32 %v2555_v47, %v824_v2  ;;  %v2577_v48 = vmul.f32 %v2558_v11, %v824_v2 }
  0xff   : > { %v2589_v12 = vadd.f32 %v2479_v28, %v714_v44  ;;  %v2592_v20 = vadd.f32 %v2482_v45, %v715_v21  ;;  %v2595_v30 = vadd.f32 %v2485_v31, %v716_v22  ;;  %v2598_v57 = vadd.f32 %v2488_v13, %v717_v23  ;;  %v3148_v28 = vld [vmem:[#allocation15_spill] sm:$0xff] }
 0x100   : > { %v455_v53 = vadd.f32 %v447_v49, %v3147_v34  ;;  %v456_v56 = vadd.f32 %v448_v39, %v3148_v28  ;;  %v457_v45 = vadd.f32 %v449_v32, %v3149_v58  ;;  %v798_v29 = vmul.f32 %v2506_v46, %v780_v41 }
 0x101   : > { %1761 = vset.pattern.permute.xlu2 %v3145_v27  ;;  %v799_v4 = vmul.f32 %v2509_v63, %v780_v41  ;;  %v800_v15 = vmul.f32 %v2512_v0, %v780_v41  ;;  %v801_v33 = vmul.f32 %v2515_v59, %v780_v41 }
 0x102   : > { %1187 = vperm.xlu2 %1761, %v2133_v6   ;;  %v2625_v27 = vmax.f32 %v455_v53, 0.0 }
 0x103   : > { %1143 = vperm.xlu1 %1760, %v2138_v7   ;;  %v728_v31 = vpop.permute.xlu1 %727 }
 0x104   : > { %v746_v16 = vmul.f32 %v2433_v25, %v728_v31  ;;  %v747_v13 = vmul.f32 %v2436_v3, %v728_v31  ;;  %v748_v38 = vmul.f32 %v2439_v19, %v728_v31  ;;  %v749_v42 = vmul.f32 %v2442_v40, %v728_v31 }
 0x105   : > { %v832_v44 = vpop.permute.xlu2 %831  ;;  %v2619_v19 = vmax.f32 %v454_v43, 0.0  ;;  %v2649_v31 = vperm.slane %v2625_v27, 0 }
 0x106   : > { %v762_v21 = vadd.f32 %v746_v16, %v2491_v14  ;;  %v763_v22 = vadd.f32 %v747_v13, %v2494_v51  ;;  %v764_v25 = vadd.f32 %v748_v38, %v2497_v55  ;;  %v765_v3 = vadd.f32 %v749_v42, %v2500_v52 }
 0x107   : > { %v850_v49 = vmul.f32 %v2549_v5, %v832_v44  ;;  %v851_v39 = vmul.f32 %v2552_v10, %v832_v44  ;;  %v852_v32 = vmul.f32 %v2555_v47, %v832_v44  ;;  %v853_v14 = vmul.f32 %v2558_v11, %v832_v44 }
 0x108   : > { %v814_v40 = vadd.f32 %v798_v29, %v762_v21  ;;  %v815_v23 = vadd.f32 %v799_v4, %v763_v22  ;;  %v816_v2 = vadd.f32 %v800_v15, %v764_v25  ;;  %v817_v35 = vadd.f32 %v801_v33, %v765_v3  ;;  %v836_v22 = vpop.permute.xlu0 %835  ;;  %v1406_v25 = vld [vmem:[#allocation2] sm:$0x1] }
 0x109   : > { %v2627_v51 = vmax.f32 %v456_v56, 0.0  ;;  %v2629_v55 = vmax.f32 %v457_v45, 0.0  ;;  %v2642_v53 = vperm.slane %v2619_v19, 0  ;;  %v1965_v21 = vmov 15   ;;  %1409 = vperm.xlu0 %1765, %v1406_v25  }
 0x10a   : > { %1195 = vperm.xlu2 %1761, %v2138_v7   ;;  %v2632_v52 = vadd.f32 %v850_v49, %v814_v40  ;;  %v2634_v41 = vadd.f32 %v851_v39, %v815_v23  ;;  %v2636_v50 = vadd.f32 %v852_v32, %v816_v2  ;;  %v2638_v43 = vadd.f32 %v853_v14, %v817_v35 }
 0x10b   : > { %1147 = vperm.xlu1 %1760, %v2153_v9   ;;  %v2652_v16 = vperm.slane %v2627_v51, 0  ;;  %v2655_v9 = vperm.slane %v2629_v55, 0  ;;  %v855_v23 = vmul.f32 %v2552_v10, %v836_v22  ;;  %v857_v2 = vmul.f32 %v2558_v11, %v836_v22 }
 0x10c   : > { %v772_v34 = vpop.permute.xlu1 %771  ;;  %v2728_v25 = vperm.slane %v2627_v51, 1 }
 0x10d   : > { %v790_v28 = vmul.f32 %v2506_v46, %v772_v34  ;;  %v791_v56 = vmul.f32 %v2509_v63, %v772_v34  ;;  %v792_v7 = vmul.f32 %v2512_v0, %v772_v34  ;;  %v793_v58 = vmul.f32 %v2515_v59, %v772_v34 }
 0x10e   : > { %v880_v45 = vpop.permute.xlu2 %879 }
 0x10f   : > { %v806_v13 = vadd.f32 %v790_v28, %v2460_v17  ;;  %v807_v38 = vadd.f32 %v791_v56, %v2462_v62  ;;  %v808_v42 = vadd.f32 %v792_v7, %v2464_v26  ;;  %v809_v29 = vadd.f32 %v793_v58, %v2466_v54  ;;  %v1783_v58 = vld [vmem:[%s3116_s2 + $0x10] sm:$0xff] }
 0x110   : > { %v2662_v4 = vmul.f32 %v2642_v53, %v880_v45  ;;  %v2665_v15 = vmul.f32 %v2649_v31, %v880_v45  ;;  %v2668_v33 = vmul.f32 %v2652_v16, %v880_v45  ;;  %v2671_v44 = vmul.f32 %v2655_v9, %v880_v45 }
 0x111   : > { %v2674_v17 = vadd.f32 %v2568_v36, %v806_v13  ;;  %v2677_v62 = vadd.f32 %v2571_v37, %v807_v38  ;;  %v2680_v26 = vadd.f32 %v2574_v18, %v808_v42  ;;  %v2683_v54 = vadd.f32 %v2577_v48, %v809_v29 }
 0x112   : > { %1764 = vset.pattern.permute.xlu2 %v1965_v21  ;;  %v854_v48 = vmul.f32 %v2549_v5, %v836_v22 }
 0x113   : > { %1243 = vperm.xlu2 %1764, %v2143_v8   ;;  %1763 = vset.pattern.permute.xlu1 %v1965_v21  ;;  %v856_v8 = vmul.f32 %v2555_v47, %v836_v22  ;;  %v2722_v21 = vperm.slane %v2619_v19, 1  ;;  %v2725_v22 = vperm.slane %v2625_v27, 1 }
 0x114   : > { %1239 = vperm.xlu1 %1763, %v2133_v6   ;;  %v784_v3 = vpop.permute.xlu1 %783 }
 0x115   : > { %v802_v36 = vmul.f32 %v2506_v46, %v784_v3  ;;  %v803_v37 = vmul.f32 %v2509_v63, %v784_v3  ;;  %v804_v40 = vmul.f32 %v2512_v0, %v784_v3  ;;  %v805_v18 = vmul.f32 %v2515_v59, %v784_v3 }
 0x116   : > { %v888_v35 = vpop.permute.xlu2 %887  ;;  %v2731_v3 = vperm.slane %v2629_v55, 1 }
 0x117   : > { %v818_v6 = vadd.f32 %v802_v36, %v2589_v12  ;;  %v819_v49 = vadd.f32 %v803_v37, %v2592_v20  ;;  %v820_v46 = vadd.f32 %v804_v40, %v2595_v30  ;;  %v821_v63 = vadd.f32 %v805_v18, %v2598_v57  ;;  %v1782_v57 = vld [vmem:[%s3116_s2 + $0x18] sm:$0xff] }
 0x118   : > { %v906_v0 = vmul.f32 %v2642_v53, %v888_v35  ;;  %v907_v59 = vmul.f32 %v2649_v31, %v888_v35  ;;  %v908_v39 = vmul.f32 %v2652_v16, %v888_v35  ;;  %v909_v32 = vmul.f32 %v2655_v9, %v888_v35 }
 0x119   : > { %v870_v14 = vadd.f32 %v854_v48, %v818_v6  ;;  %v871_v34 = vadd.f32 %v855_v23, %v819_v49  ;;  %v872_v28 = vadd.f32 %v856_v8, %v820_v46  ;;  %v873_v56 = vadd.f32 %v857_v2, %v821_v63 }
 0x11a   : > { %v2757_v2 = vperm.slane %v2625_v27, 2  ;;  %v2760_v35 = vperm.slane %v2627_v51, 2 }
 0x11b   : > { %v2703_v7 = vadd.f32 %v906_v0, %v870_v14  ;;  %v2705_v12 = vadd.f32 %v907_v59, %v871_v34  ;;  %v2707_v20 = vadd.f32 %v908_v39, %v872_v28  ;;  %v2709_v30 = vadd.f32 %v909_v32, %v873_v56  ;;  %1251 = vperm.xlu2 %1764, %v1782_v57  }
 0x11c   : > { %1247 = vperm.xlu1 %1763, %v1783_v58  }
 0x11d   : > { %v828_v45 = vpop.permute.xlu1 %827 }
 0x11e   : > { %v846_v13 = vmul.f32 %v2549_v5, %v828_v45  ;;  %v847_v38 = vmul.f32 %v2552_v10, %v828_v45  ;;  %v848_v42 = vmul.f32 %v2555_v47, %v828_v45  ;;  %v849_v29 = vmul.f32 %v2558_v11, %v828_v45 }
 0x11f   : > { %v936_v36 = vpop.permute.xlu2 %935 }
 0x120   : > { %v862_v5 = vadd.f32 %v846_v13, %v2533_v24  ;;  %v863_v10 = vadd.f32 %v847_v38, %v2535_v60  ;;  %v864_v47 = vadd.f32 %v848_v42, %v2537_v61  ;;  %v865_v11 = vadd.f32 %v849_v29, %v2539_v1  ;;  %v928_v61 = vpop.permute.xlu0 %927 }
 0x121   : > { %v954_v37 = vmul.f32 %v2722_v21, %v936_v36  ;;  %v955_v40 = vmul.f32 %v2725_v22, %v936_v36  ;;  %v956_v18 = vmul.f32 %v2728_v25, %v936_v36  ;;  %v957_v48 = vmul.f32 %v2731_v3, %v936_v36 }
 0x122   : > { %v2742_v23 = vadd.f32 %v2662_v4, %v862_v5  ;;  %v2745_v8 = vadd.f32 %v2665_v15, %v863_v10  ;;  %v2748_v24 = vadd.f32 %v2668_v33, %v864_v47  ;;  %v2751_v60 = vadd.f32 %v2671_v44, %v865_v11 }
 0x123   : > { %v2754_v1 = vperm.slane %v2619_v19, 2  ;;  %v2763_v4 = vperm.slane %v2629_v55, 2  ;;  %v946_v63 = vmul.f32 %v2722_v21, %v928_v61  ;;  %v947_v0 = vmul.f32 %v2725_v22, %v928_v61 }
 0x124   : > { %v948_v59 = vmul.f32 %v2728_v25, %v928_v61  ;;  %v949_v39 = vmul.f32 %v2731_v3, %v928_v61 }
 0x127   : > { %v876_v15 = vpop.permute.xlu1 %875 }
 0x128   : > { %v894_v33 = vmul.f32 %v2642_v53, %v876_v15  ;;  %v895_v6 = vmul.f32 %v2649_v31, %v876_v15  ;;  %v896_v44 = vmul.f32 %v2652_v16, %v876_v15  ;;  %v897_v49 = vmul.f32 %v2655_v9, %v876_v15  ;;  %v980_v46 = vpop.permute.xlu2 %979 }
 0x129   : > { %v998_v56 = vmul.f32 %v2754_v1, %v980_v46  ;;  %v999_v57 = vmul.f32 %v2757_v2, %v980_v46  ;;  %v1000_v58 = vmul.f32 %v2760_v35, %v980_v46  ;;  %v1001_v45 = vmul.f32 %v2763_v4, %v980_v46 }
 0x12a   : > { %v910_v32 = vadd.f32 %v894_v33, %v2674_v17  ;;  %v911_v14 = vadd.f32 %v895_v6, %v2677_v62  ;;  %v912_v34 = vadd.f32 %v896_v44, %v2680_v26  ;;  %v913_v28 = vadd.f32 %v897_v49, %v2683_v54 }
 0x12c   : > { %v962_v13 = vadd.f32 %v946_v63, %v910_v32  ;;  %v963_v38 = vadd.f32 %v947_v0, %v911_v14  ;;  %v964_v42 = vadd.f32 %v948_v59, %v912_v34  ;;  %v965_v29 = vadd.f32 %v949_v39, %v913_v28 }
 0x12e   : > { %v2781_v36 = vadd.f32 %v998_v56, %v962_v13  ;;  %v2783_v17 = vadd.f32 %v999_v57, %v963_v38  ;;  %v2785_v62 = vadd.f32 %v1000_v58, %v964_v42  ;;  %v2787_v26 = vadd.f32 %v1001_v45, %v965_v29 }
 0x12f   : > { %v884_v54 = vpop.permute.xlu1 %883 }
 0x130   : > { %v902_v5 = vmul.f32 %v2642_v53, %v884_v54  ;;  %v903_v10 = vmul.f32 %v2649_v31, %v884_v54  ;;  %v904_v47 = vmul.f32 %v2652_v16, %v884_v54  ;;  %v905_v11 = vmul.f32 %v2655_v9, %v884_v54  ;;  %v992_v61 = vpop.permute.xlu2 %991  ;;  %v984_v16 = vpop.permute.xlu0 %983 }
 0x131   : > { %v2806_v9 = vperm.slane %v2619_v19, 3  ;;  %v1002_v0 = vmul.f32 %v2754_v1, %v984_v16  ;;  %v1003_v59 = vmul.f32 %v2757_v2, %v984_v16  ;;  %v1004_v39 = vmul.f32 %v2760_v35, %v984_v16 }
 0x132   : > { %v918_v15 = vadd.f32 %v902_v5, %v2632_v52  ;;  %v919_v33 = vadd.f32 %v903_v10, %v2634_v41  ;;  %v920_v6 = vadd.f32 %v904_v47, %v2636_v50  ;;  %v921_v44 = vadd.f32 %v905_v11, %v2638_v43 }
 0x133   : > { %v2809_v52 = vperm.slane %v2625_v27, 3  ;;  %v2812_v41 = vperm.slane %v2627_v51, 3  ;;  %v2815_v50 = vperm.slane %v2629_v55, 3  ;;  %v1005_v32 = vmul.f32 %v2763_v4, %v984_v16 }
 0x134   : > { %v2797_v49 = vadd.f32 %v954_v37, %v918_v15  ;;  %v2799_v46 = vadd.f32 %v955_v40, %v919_v33  ;;  %v2801_v53 = vadd.f32 %v956_v18, %v920_v6  ;;  %v2803_v31 = vadd.f32 %v957_v48, %v921_v44 }
 0x135   : > { %v2840_v11 = vperm.slane %v2627_v51, 4  ;;  %v2843_v15 = vperm.slane %v2629_v55, 4 }
 0x138   : > { %v932_v43 = vpop.permute.xlu1 %931 }
 0x139   : > { %v950_v37 = vmul.f32 %v2722_v21, %v932_v43  ;;  %v951_v40 = vmul.f32 %v2725_v22, %v932_v43  ;;  %v952_v18 = vmul.f32 %v2728_v25, %v932_v43  ;;  %v953_v48 = vmul.f32 %v2731_v3, %v932_v43  ;;  %v1036_v63 = vpop.permute.xlu2 %1035 }
 0x13a   : > { %v1054_v57 = vmul.f32 %v2806_v9, %v1036_v63  ;;  %v1055_v58 = vmul.f32 %v2809_v52, %v1036_v63  ;;  %v1056_v45 = vmul.f32 %v2812_v41, %v1036_v63  ;;  %v1057_v13 = vmul.f32 %v2815_v50, %v1036_v63 }
 0x13b   : > { %v966_v14 = vadd.f32 %v950_v37, %v2742_v23  ;;  %v967_v34 = vadd.f32 %v951_v40, %v2745_v8  ;;  %v968_v28 = vadd.f32 %v952_v18, %v2748_v24  ;;  %v969_v56 = vadd.f32 %v953_v48, %v2751_v60 }
 0x13c   : > { %v2834_v24 = vperm.slane %v2619_v19, 4  ;;  %v2837_v60 = vperm.slane %v2625_v27, 4  ;;  %v1010_v43 = vmul.f32 %v2754_v1, %v992_v61  ;;  %v1011_v37 = vmul.f32 %v2757_v2, %v992_v61 }
 0x13d   : > { %v1018_v38 = vadd.f32 %v1002_v0, %v966_v14  ;;  %v1019_v42 = vadd.f32 %v1003_v59, %v967_v34  ;;  %v1020_v29 = vadd.f32 %v1004_v39, %v968_v28  ;;  %v1021_v54 = vadd.f32 %v1005_v32, %v969_v56  ;;  %v1040_v28 = vpop.permute.xlu0 %1039 }
 0x13e   : > { %v1012_v40 = vmul.f32 %v2760_v35, %v992_v61  ;;  %v1013_v18 = vmul.f32 %v2763_v4, %v992_v61 }
 0x13f   : > { %v1070_v5 = vadd.f32 %v1054_v57, %v1018_v38  ;;  %v1071_v23 = vadd.f32 %v1055_v58, %v1019_v42  ;;  %v1072_v10 = vadd.f32 %v1056_v45, %v1020_v29  ;;  %v1073_v8 = vadd.f32 %v1057_v13, %v1021_v54 }
 0x140   : > { %v940_v47 = vpop.permute.xlu1 %939  ;;  %v1058_v38 = vmul.f32 %v2806_v9, %v1040_v28  ;;  %v1059_v42 = vmul.f32 %v2809_v52, %v1040_v28  ;;  %v1060_v29 = vmul.f32 %v2812_v41, %v1040_v28  ;;  %v1061_v54 = vmul.f32 %v2815_v50, %v1040_v28 }
 0x141   : > { %v958_v33 = vmul.f32 %v2722_v21, %v940_v47  ;;  %v959_v6 = vmul.f32 %v2725_v22, %v940_v47  ;;  %v960_v44 = vmul.f32 %v2728_v25, %v940_v47  ;;  %v961_v16 = vmul.f32 %v2731_v3, %v940_v47 }
 0x142   : > { %v2916_v28 = vperm.slane %v2627_v51, 5 }
 0x143   : > { %v974_v48 = vadd.f32 %v958_v33, %v2703_v7  ;;  %v975_v63 = vadd.f32 %v959_v6, %v2705_v12  ;;  %v976_v21 = vadd.f32 %v960_v44, %v2707_v20  ;;  %v977_v22 = vadd.f32 %v961_v16, %v2709_v30  ;;  %v1088_v0 = vpop.permute.xlu2 %1087 }
 0x144   : > { %v1106_v25 = vmul.f32 %v2834_v24, %v1088_v0  ;;  %v1107_v3 = vmul.f32 %v2837_v60, %v1088_v0  ;;  %v1108_v59 = vmul.f32 %v2840_v11, %v1088_v0  ;;  %v1109_v39 = vmul.f32 %v2843_v15, %v1088_v0 }
 0x145   : > { %v2861_v32 = vadd.f32 %v1010_v43, %v974_v48  ;;  %v2863_v61 = vadd.f32 %v1011_v37, %v975_v63  ;;  %v2865_v7 = vadd.f32 %v1012_v40, %v976_v21  ;;  %v2867_v12 = vadd.f32 %v1013_v18, %v977_v22 }
 0x146   : > { %v2869_v20 = vadd.f32 %v1106_v25, %v1070_v5  ;;  %v2871_v30 = vadd.f32 %v1107_v3, %v1071_v23  ;;  %v2873_v14 = vadd.f32 %v1108_v59, %v1072_v10  ;;  %v2875_v34 = vadd.f32 %v1109_v39, %v1073_v8  ;;  %v1136_v3 = vpop.permute.xlu0 %1135 }
 0x147   : > { %v2910_v59 = vperm.slane %v2619_v19, 5  ;;  %v2913_v39 = vperm.slane %v2625_v27, 5 }
 0x149   : > { %v988_v56 = vpop.permute.xlu1 %987 }
 0x14a   : > { %v1006_v57 = vmul.f32 %v2754_v1, %v988_v56  ;;  %v1007_v58 = vmul.f32 %v2757_v2, %v988_v56  ;;  %v1008_v45 = vmul.f32 %v2760_v35, %v988_v56  ;;  %v1009_v13 = vmul.f32 %v2763_v4, %v988_v56 }
 0x14b   : > { %v1092_v5 = vpop.permute.xlu2 %1091  ;;  %v2919_v56 = vperm.slane %v2629_v55, 5 }
 0x14c   : > { %v1022_v23 = vadd.f32 %v1006_v57, %v2797_v49  ;;  %v1023_v10 = vadd.f32 %v1007_v58, %v2799_v46  ;;  %v1024_v1 = vadd.f32 %v1008_v45, %v2801_v53  ;;  %v1025_v2 = vadd.f32 %v1009_v13, %v2803_v31 }
 0x14d   : > { %v1110_v35 = vmul.f32 %v2834_v24, %v1092_v5  ;;  %v1111_v4 = vmul.f32 %v2837_v60, %v1092_v5  ;;  %v1112_v8 = vmul.f32 %v2840_v11, %v1092_v5  ;;  %v1113_v47 = vmul.f32 %v2843_v15, %v1092_v5 }
 0x14e   : > { %v1074_v33 = vadd.f32 %v1058_v38, %v1022_v23  ;;  %v1075_v6 = vadd.f32 %v1059_v42, %v1023_v10  ;;  %v1076_v44 = vadd.f32 %v1060_v29, %v1024_v1  ;;  %v1077_v16 = vadd.f32 %v1061_v54, %v1025_v2 }
 0x14f   : > { %v1154_v29 = vmul.f32 %v2910_v59, %v1136_v3  ;;  %v1155_v54 = vmul.f32 %v2913_v39, %v1136_v3  ;;  %v1156_v5 = vmul.f32 %v2916_v28, %v1136_v3  ;;  %v1157_v23 = vmul.f32 %v2919_v56, %v1136_v3 }
 0x150   : > { %v2893_v43 = vadd.f32 %v1110_v35, %v1074_v33  ;;  %v2895_v49 = vadd.f32 %v1111_v4, %v1075_v6  ;;  %v2897_v46 = vadd.f32 %v1112_v8, %v1076_v44  ;;  %v2899_v53 = vadd.f32 %v1113_v47, %v1077_v16 }
 0x152   : > { %v1032_v31 = vpop.permute.xlu1 %1031 }
 0x153   : > { %v1050_v37 = vmul.f32 %v2806_v9, %v1032_v31  ;;  %v1051_v40 = vmul.f32 %v2809_v52, %v1032_v31  ;;  %v1052_v18 = vmul.f32 %v2812_v41, %v1032_v31  ;;  %v1053_v48 = vmul.f32 %v2815_v50, %v1032_v31  ;;  %v1096_v63 = vpop.permute.xlu2 %1095 }
 0x155   : > { %v1066_v21 = vadd.f32 %v1050_v37, %v2781_v36  ;;  %v1067_v22 = vadd.f32 %v1051_v40, %v2783_v17  ;;  %v1068_v0 = vadd.f32 %v1052_v18, %v2785_v62  ;;  %v1069_v25 = vadd.f32 %v1053_v48, %v2787_v26 }
 0x156   : > { %v2922_v36 = vperm.slane %v2619_v19, 6  ;;  %v2925_v17 = vperm.slane %v2625_v27, 6  ;;  %v2928_v62 = vperm.slane %v2627_v51, 6  ;;  %v2931_v26 = vperm.slane %v2629_v55, 6 }
 0x15b   : > { %v1084_v57 = vpop.permute.xlu1 %1083 }
 0x15c   : > { %v1102_v58 = vmul.f32 %v2834_v24, %v1084_v57  ;;  %v1103_v45 = vmul.f32 %v2837_v60, %v1084_v57  ;;  %v1104_v13 = vmul.f32 %v2840_v11, %v1084_v57  ;;  %v1105_v38 = vmul.f32 %v2843_v15, %v1084_v57  ;;  %v1188_v42 = vpop.permute.xlu2 %1187 }
 0x15d   : > { %v1206_v4 = vmul.f32 %v2922_v36, %v1188_v42  ;;  %v1207_v8 = vmul.f32 %v2925_v17, %v1188_v42  ;;  %v1208_v47 = vmul.f32 %v2928_v62, %v1188_v42  ;;  %v1209_v33 = vmul.f32 %v2931_v26, %v1188_v42 }
 0x15e   : > { %v1118_v10 = vadd.f32 %v1102_v58, %v1066_v21  ;;  %v1119_v1 = vadd.f32 %v1103_v45, %v1067_v22  ;;  %v1120_v2 = vadd.f32 %v1104_v13, %v1068_v0  ;;  %v1121_v35 = vadd.f32 %v1105_v38, %v1069_v25 }
 0x15f   : > { %v1114_v58 = vmul.f32 %v2834_v24, %v1096_v63  ;;  %v1115_v45 = vmul.f32 %v2837_v60, %v1096_v63  ;;  %v1116_v13 = vmul.f32 %v2840_v11, %v1096_v63  ;;  %v1117_v38 = vmul.f32 %v2843_v15, %v1096_v63  ;;  %v1192_v60 = vpop.permute.xlu0 %1191 }
 0x160   : > { %v1170_v6 = vadd.f32 %v1154_v29, %v1118_v10  ;;  %v1171_v44 = vadd.f32 %v1155_v54, %v1119_v1  ;;  %v1172_v16 = vadd.f32 %v1156_v5, %v1120_v2  ;;  %v1173_v31 = vadd.f32 %v1157_v23, %v1121_v35 }
 0x161   : > { %v2974_v15 = vperm.slane %v2619_v19, 7  ;;  %v1210_v19 = vmul.f32 %v2922_v36, %v1192_v60  ;;  %v1212_v1 = vmul.f32 %v2928_v62, %v1192_v60 }
 0x162   : > { %v2945_v37 = vadd.f32 %v1206_v4, %v1170_v6  ;;  %v2947_v40 = vadd.f32 %v1207_v8, %v1171_v44  ;;  %v2949_v18 = vadd.f32 %v1208_v47, %v1172_v16  ;;  %v2951_v48 = vadd.f32 %v1209_v33, %v1173_v31 }
 0x164   : > { %v1044_v21 = vpop.permute.xlu1 %1043  ;;  %v1196_v22 = vpop.permute.xlu2 %1195 }
 0x165   : > { %v1062_v0 = vmul.f32 %v2806_v9, %v1044_v21  ;;  %v1063_v25 = vmul.f32 %v2809_v52, %v1044_v21  ;;  %v1064_v3 = vmul.f32 %v2812_v41, %v1044_v21  ;;  %v1065_v57 = vmul.f32 %v2815_v50, %v1044_v21 }
 0x167   : > { %v1078_v42 = vadd.f32 %v1062_v0, %v2861_v32  ;;  %v1079_v29 = vadd.f32 %v1063_v25, %v2863_v61  ;;  %v1080_v9 = vadd.f32 %v1064_v3, %v2865_v7  ;;  %v1081_v52 = vadd.f32 %v1065_v57, %v2867_v12 }
 0x168   : > { %v2977_v32 = vperm.slane %v2625_v27, 7  ;;  %v2980_v61 = vperm.slane %v2627_v51, 7  ;;  %v2983_v7 = vperm.slane %v2629_v55, 7  ;;  %v1211_v27 = vmul.f32 %v2925_v17, %v1192_v60 }
 0x169   : > { %v2965_v54 = vadd.f32 %v1114_v58, %v1078_v42  ;;  %v2967_v41 = vadd.f32 %v1115_v45, %v1079_v29  ;;  %v2969_v50 = vadd.f32 %v1116_v13, %v1080_v9  ;;  %v2971_v24 = vadd.f32 %v1117_v38, %v1081_v52 }
 0x16a   : > { %v1213_v51 = vmul.f32 %v2931_v26, %v1192_v60  ;;  %v1214_v45 = vmul.f32 %v2922_v36, %v1196_v22  ;;  %v1215_v13 = vmul.f32 %v2925_v17, %v1196_v22  ;;  %v1216_v38 = vmul.f32 %v2928_v62, %v1196_v22 }
 0x16b   : > { %v1217_v42 = vmul.f32 %v2931_v26, %v1196_v22 }
 0x16d   : > { %v1140_v11 = vpop.permute.xlu1 %1139  ;;  %v1244_v12 = vpop.permute.xlu2 %1243 }
 0x16e   : > { %v1158_v63 = vmul.f32 %v2910_v59, %v1140_v11  ;;  %v1159_v5 = vmul.f32 %v2913_v39, %v1140_v11  ;;  %v1160_v23 = vmul.f32 %v2916_v28, %v1140_v11  ;;  %v1161_v10 = vmul.f32 %v2919_v56, %v1140_v11  ;;  %v1200_v11 = vpop.permute.xlu0 %1199 }
 0x16f   : > { %v1262_v8 = vmul.f32 %v2974_v15, %v1244_v12  ;;  %v1263_v47 = vmul.f32 %v2977_v32, %v1244_v12  ;;  %v1264_v33 = vmul.f32 %v2980_v61, %v1244_v12  ;;  %v1265_v6 = vmul.f32 %v2983_v7, %v1244_v12 }
 0x170   : > { %v1174_v55 = vadd.f32 %v1158_v63, %v2869_v20  ;;  %v1175_v2 = vadd.f32 %v1159_v5, %v2871_v30  ;;  %v1176_v35 = vadd.f32 %v1160_v23, %v2873_v14  ;;  %v1177_v4 = vadd.f32 %v1161_v10, %v2875_v34 }
 0x172   : > { %v1226_v44 = vadd.f32 %v1210_v19, %v1174_v55  ;;  %v1227_v16 = vadd.f32 %v1211_v27, %v1175_v2  ;;  %v1228_v31 = vadd.f32 %v1212_v1, %v1176_v35  ;;  %v1229_v21 = vadd.f32 %v1213_v51, %v1177_v4  ;;  %v1294_v55 = vld [vmem:[#allocation8 + $0x20] sm:$0xff]  ;;  %v1295_v2 = vld [vmem:[#allocation8 + $0x28] sm:$0xff]  ;;  %v1296_v35 = vld [vmem:[#allocation8 + $0x30] sm:$0xff] }
 0x173   : > { %v1219_v27 = vmul.f32 %v2925_v17, %v1200_v11  ;;  %v1220_v1 = vmul.f32 %v2928_v62, %v1200_v11  ;;  %v1221_v51 = vmul.f32 %v2931_v26, %v1200_v11  ;;  %v1297_v4 = vld [vmem:[#allocation8 + $0x38] sm:$0xff] }
 0x174   : > { %v1278_v0 = vadd.f32 %v1262_v8, %v1226_v44  ;;  %v1279_v20 = vadd.f32 %v1263_v47, %v1227_v16  ;;  %v1280_v25 = vadd.f32 %v1264_v33, %v1228_v31  ;;  %v1281_v30 = vadd.f32 %v1265_v6, %v1229_v21 }
 0x175   : > { %v1144_v3 = vpop.permute.xlu1 %1143  ;;  %v1252_v19 = vpop.permute.xlu2 %1251 }
 0x176   : > { %v1162_v14 = vmul.f32 %v2910_v59, %v1144_v3  ;;  %v1163_v34 = vmul.f32 %v2913_v39, %v1144_v3  ;;  %v1164_v57 = vmul.f32 %v2916_v28, %v1144_v3  ;;  %v1165_v58 = vmul.f32 %v2919_v56, %v1144_v3 }
 0x177   : > { %v1271_v17 = vmul.f32 %v2977_v32, %v1252_v19  ;;  %v1272_v62 = vmul.f32 %v2980_v61, %v1252_v19  ;;  %v1273_v26 = vmul.f32 %v2983_v7, %v1252_v19  ;;  %v1310_v44 = vadd.f32 %v1294_v55, %v1278_v0 }
 0x178   : > { %v1178_v29 = vadd.f32 %v1162_v14, %v2893_v43  ;;  %v1179_v9 = vadd.f32 %v1163_v34, %v2895_v49  ;;  %v1180_v52 = vadd.f32 %v1164_v57, %v2897_v46  ;;  %v1181_v60 = vadd.f32 %v1165_v58, %v2899_v53  ;;  %v1290_v14 = vld [vmem:[#allocation8] sm:$0xff]  ;;  %v1291_v34 = vld [vmem:[#allocation8 + $0x8] sm:$0xff]  ;;  %v1292_v57 = vld [vmem:[#allocation8 + $0x10] sm:$0xff] }
 0x179   : > { %v1218_v53 = vmul.f32 %v2922_v36, %v1200_v11  ;;  %v1270_v36 = vmul.f32 %v2974_v15, %v1252_v19  ;;  %v1312_v16 = vadd.f32 %v1296_v35, %v1280_v25  ;;  %v1326_v0 = vmax.f32 %v1310_v44, 0.0  ;;  %v1344_v19 = vld [vmem:[#allocation6 + $0x30] sm:$0xff]  ;;  %v1339_v35 = vld [vmem:[#allocation6 + $0x8] sm:$0xff] }
 0x17a   : > { %v3013_v12 = vadd.f32 %v1214_v45, %v1178_v29  ;;  %v3015_v63 = vadd.f32 %v1215_v13, %v1179_v9  ;;  %v3017_v5 = vadd.f32 %v1216_v38, %v1180_v52  ;;  %v3019_v23 = vadd.f32 %v1217_v42, %v1181_v60  ;;  %v1293_v42 = vld [vmem:[#allocation8 + $0x18] sm:$0xff]  ;;  %v1342_v29 = vld [vmem:[#allocation6 + $0x20] sm:$0xff] }
 0x17b   : > { %v1328_v25 = vmax.f32 %v1312_v16, 0.0  ;;  %v1298_v16 = vld [vmem:[#allocation8 + $0x40] sm:$0xff] }
 0x17d   : > { %v1148_v10 = vpop.permute.xlu1 %1147 }
 0x17e   : > { %v1166_v22 = vmul.f32 %v2910_v59, %v1148_v10  ;;  %v1167_v43 = vmul.f32 %v2913_v39, %v1148_v10  ;;  %v1168_v49 = vmul.f32 %v2916_v28, %v1148_v10  ;;  %v1169_v46 = vmul.f32 %v2919_v56, %v1148_v10  ;;  %v1343_v10 = vld [vmem:[#allocation6 + $0x28] sm:$0xff] }
 0x180   : > { %v1182_v59 = vadd.f32 %v1166_v22, %v2965_v54  ;;  %v1183_v39 = vadd.f32 %v1167_v43, %v2967_v41  ;;  %v1184_v28 = vadd.f32 %v1168_v49, %v2969_v50  ;;  %v1185_v56 = vadd.f32 %v1169_v46, %v2971_v24  ;;  %v1345_v22 = vld [vmem:[#allocation6 + $0x38] sm:$0xff]  ;;  %v1302_v43 = vld [vmem:[#allocation8 + $0x60] sm:$0xff]  ;;  %v1303_v49 = vld [vmem:[#allocation8 + $0x68] sm:$0xff] }
 0x181   : > { %v1311_v54 = vadd.f32 %v1295_v2, %v1279_v20  ;;  %v1313_v41 = vadd.f32 %v1297_v4, %v1281_v30  ;;  %v1304_v46 = vld [vmem:[#allocation8 + $0x70] sm:$0xff]  ;;  %v1341_v4 = vld [vmem:[#allocation6 + $0x18] sm:$0xff] }
 0x182   : > { %v1234_v8 = vadd.f32 %v1218_v53, %v1182_v59  ;;  %v1235_v47 = vadd.f32 %v1219_v27, %v1183_v39  ;;  %v1236_v33 = vadd.f32 %v1220_v1, %v1184_v28  ;;  %v1237_v6 = vadd.f32 %v1221_v51, %v1185_v56  ;;  %v1305_v53 = vld [vmem:[#allocation8 + $0x78] sm:$0xff]  ;;  %v1338_v27 = vld [vmem:[#allocation6] sm:$0xff] }
 0x183   : > { %v1327_v20 = vmax.f32 %v1311_v54, 0.0  ;;  %v1329_v30 = vmax.f32 %v1313_v41, 0.0 }
 0x184   : > { %v1286_v31 = vadd.f32 %v1270_v36, %v1234_v8  ;;  %v1287_v50 = vadd.f32 %v1271_v17, %v1235_v47  ;;  %v1288_v21 = vadd.f32 %v1272_v62, %v1236_v33  ;;  %v1289_v24 = vadd.f32 %v1273_v26, %v1237_v6 }
 0x185   : > { %v1359_v59 = vmul.f32 %v1343_v10, %v1327_v20  ;;  %v1361_v39 = vmul.f32 %v1345_v22, %v1329_v30  ;;  %v1347_v20 = vld [vmem:[#allocation6 + $0x48] sm:$0xff]  ;;  %v1350_v10 = vld [vmem:[#allocation6 + $0x60] sm:$0xff] }
 0x186   : > { %v1240_v3 = vpop.permute.xlu1 %1239  ;;  %v1318_v17 = vadd.f32 %v1302_v43, %v1286_v31  ;;  %v1319_v62 = vadd.f32 %v1303_v49, %v1287_v50  ;;  %v1320_v26 = vadd.f32 %v1304_v46, %v1288_v21  ;;  %v1321_v8 = vadd.f32 %v1305_v53, %v1289_v24  ;;  %v1301_v31 = vld [vmem:[#allocation8 + $0x58] sm:$0xff] }
 0x187   : > { %v1258_v58 = vmul.f32 %v2974_v15, %v1240_v3  ;;  %v1259_v45 = vmul.f32 %v2977_v32, %v1240_v3  ;;  %v1260_v13 = vmul.f32 %v2980_v61, %v1240_v3  ;;  %v1261_v38 = vmul.f32 %v2983_v7, %v1240_v3 }
 0x189   : > { %v1274_v9 = vadd.f32 %v1258_v58, %v2945_v37  ;;  %v1275_v52 = vadd.f32 %v1259_v45, %v2947_v40  ;;  %v1276_v60 = vadd.f32 %v1260_v13, %v2949_v18  ;;  %v1277_v11 = vadd.f32 %v1261_v38, %v2951_v48  ;;  %v1340_v37 = vld [vmem:[#allocation6 + $0x10] sm:$0xff] }
 0x18a   : > { %v1358_v40 = vmul.f32 %v1342_v29, %v1326_v0  ;;  %v1360_v18 = vmul.f32 %v1344_v19, %v1328_v25  ;;  %v1300_v58 = vld [vmem:[#allocation8 + $0x50] sm:$0xff]  ;;  %v1349_v25 = vld [vmem:[#allocation6 + $0x58] sm:$0xff] }
 0x18b   : > { %v1306_v1 = vadd.f32 %v1290_v14, %v1274_v9  ;;  %v1307_v51 = vadd.f32 %v1291_v34, %v1275_v52  ;;  %v1308_v55 = vadd.f32 %v1292_v57, %v1276_v60  ;;  %v1309_v2 = vadd.f32 %v1293_v42, %v1277_v11  ;;  %v1299_v57 = vld [vmem:[#allocation8 + $0x48] sm:$0xff]  ;;  %v1352_v19 = vld [vmem:[#allocation6 + $0x70] sm:$0xff] }
 0x18c   : > { %v1334_v9 = vmax.f32 %v1318_v17, 0.0  ;;  %v1335_v52 = vmax.f32 %v1319_v62, 0.0  ;;  %v1336_v60 = vmax.f32 %v1320_v26, 0.0  ;;  %v1337_v11 = vmax.f32 %v1321_v8, 0.0 }
 0x18d   : > { %v1322_v48 = vmax.f32 %v1306_v1, 0.0  ;;  %v1323_v28 = vmax.f32 %v1307_v51, 0.0  ;;  %v1324_v56 = vmax.f32 %v1308_v55, 0.0  ;;  %v1325_v36 = vmax.f32 %v1309_v2, 0.0 }
 0x18e   : > { %v1248_v47 = vpop.permute.xlu1 %1247  ;;  %v1366_v1 = vmul.f32 %v1350_v10, %v1334_v9  ;;  %v1368_v55 = vmul.f32 %v1352_v19, %v1336_v60 }
 0x18f   : > { %v1354_v33 = vmul.f32 %v1338_v27, %v1322_v48  ;;  %v1355_v6 = vmul.f32 %v1339_v35, %v1323_v28  ;;  %v1356_v44 = vmul.f32 %v1340_v37, %v1324_v56  ;;  %v1357_v54 = vmul.f32 %v1341_v4, %v1325_v36 }
 0x190   : > { %v1266_v41 = vmul.f32 %v2974_v15, %v1248_v47  ;;  %v1267_v3 = vmul.f32 %v2977_v32, %v1248_v47  ;;  %v1268_v14 = vmul.f32 %v2980_v61, %v1248_v47  ;;  %v1269_v34 = vmul.f32 %v2983_v7, %v1248_v47  ;;  %v1346_v32 = vld [vmem:[#allocation6 + $0x40] sm:$0xff]  ;;  %v1348_v61 = vld [vmem:[#allocation6 + $0x50] sm:$0xff] }
 0x191   : > { %v1370_v50 = vadd.f32 %v1358_v40, %v1354_v33  ;;  %v1379_v21 = vadd.f32 %v1359_v59, %v1355_v6  ;;  %v1388_v24 = vadd.f32 %v1360_v18, %v1356_v44  ;;  %v1397_v45 = vadd.f32 %v1361_v39, %v1357_v54  ;;  %v1410_v33 = vpop.permute.xlu0 %1409 }
 0x192   : > { %v1282_v13 = vadd.f32 %v1266_v41, %v3013_v12  ;;  %v1283_v38 = vadd.f32 %v1267_v3, %v3015_v63  ;;  %v1284_v0 = vadd.f32 %v1268_v14, %v3017_v5  ;;  %v1285_v15 = vadd.f32 %v1269_v34, %v3019_v23  ;;  %v1351_v12 = vld [vmem:[#allocation6 + $0x68] sm:$0xff]  ;;  %v1353_v63 = vld [vmem:[#allocation6 + $0x78] sm:$0xff] }
 0x193   : > { %v1367_v51 = vmul.f32 %v1351_v12, %v1335_v52  ;;  %v1369_v2 = vmul.f32 %v1353_v63, %v1337_v11 }
 0x194   : > { %v1314_v7 = vadd.f32 %v1298_v16, %v1282_v13  ;;  %v1315_v30 = vadd.f32 %v1299_v57, %v1283_v38  ;;  %v1316_v42 = vadd.f32 %v1300_v58, %v1284_v0  ;;  %v1317_v29 = vadd.f32 %v1301_v31, %v1285_v15 }
 0x195   : > { %v1412_v57 = vperm.slane %v1410_v33, 0 }
 0x196   : > { %v1330_v22 = vmax.f32 %v1314_v7, 0.0  ;;  %v1331_v5 = vmax.f32 %v1315_v30, 0.0  ;;  %v1332_v43 = vmax.f32 %v1316_v42, 0.0  ;;  %v1333_v23 = vmax.f32 %v1317_v29, 0.0 }
 0x198   : > { %v1362_v49 = vmul.f32 %v1346_v32, %v1330_v22  ;;  %v1363_v46 = vmul.f32 %v1347_v20, %v1331_v5  ;;  %v1364_v53 = vmul.f32 %v1348_v61, %v1332_v43  ;;  %v1365_v27 = vmul.f32 %v1349_v25, %v1333_v23 }
 0x19a   : > { %v1371_v35 = vadd.f32 %v1370_v50, %v1362_v49  ;;  %v1380_v37 = vadd.f32 %v1379_v21, %v1363_v46  ;;  %v1389_v4 = vadd.f32 %v1388_v24, %v1364_v53  ;;  %v1398_v40 = vadd.f32 %v1397_v45, %v1365_v27 }
 0x19c   : > { %v1372_v59 = vadd.f32 %v1371_v35, %v1366_v1  ;;  %v1381_v18 = vadd.f32 %v1380_v37, %v1367_v51  ;;  %v1390_v39 = vadd.f32 %v1389_v4, %v1368_v55  ;;  %v1399_v48 = vadd.f32 %v1398_v40, %v1369_v2 }
 0x19d   : > { %v1507_v51 = vlaneseq }
 0x19e   : > { %v1373_v28 = vrot.slane %v1372_v59, 4  ;;  %v1382_v56 = vrot.slane %v1381_v18, 4  ;;  %v1391_v36 = vrot.slane %v1390_v39, 4  ;;  %v1400_v17 = vrot.slane %v1399_v48, 4 }
 0x1a0   : > { %v1374_v62 = vadd.f32 %v1373_v28, %v1372_v59  ;;  %v1383_v26 = vadd.f32 %v1382_v56, %v1381_v18  ;;  %v1392_v8 = vadd.f32 %v1391_v36, %v1390_v39  ;;  %v1401_v47 = vadd.f32 %v1400_v17, %v1399_v48 }
 0x1a2   : > { %v1375_v6 = vrot.slane %v1374_v62, 2  ;;  %v1384_v44 = vrot.slane %v1383_v26, 2  ;;  %v1393_v54 = vrot.slane %v1392_v8, 2  ;;  %v1402_v16 = vrot.slane %v1401_v47, 2 }
 0x1a4   : > { %v1376_v41 = vadd.f32 %v1375_v6, %v1374_v62  ;;  %v1385_v3 = vadd.f32 %v1384_v44, %v1383_v26  ;;  %v1394_v14 = vadd.f32 %v1393_v54, %v1392_v8  ;;  %v1403_v34 = vadd.f32 %v1402_v16, %v1401_v47 }
 0x1a6   : > { %v1377_v58 = vrot.slane %v1376_v41, 1  ;;  %v1386_v31 = vrot.slane %v1385_v3, 1  ;;  %v1395_v50 = vrot.slane %v1394_v14, 1  ;;  %v1404_v21 = vrot.slane %v1403_v34, 1 }
 0x1a8   : > { %v1378_v24 = vadd.f32 %v1377_v58, %v1376_v41  ;;  %v1387_v45 = vadd.f32 %v1386_v31, %v1385_v3  ;;  %v1396_v13 = vadd.f32 %v1395_v50, %v1394_v14  ;;  %v1405_v38 = vadd.f32 %v1404_v21, %v1403_v34 }
 0x1aa   : > { %v1413_v0 = vadd.f32 %v1412_v57, %v1378_v24  ;;  %v1414_v15 = vadd.f32 %v1412_v57, %v1387_v45  ;;  %v1415_v32 = vadd.f32 %v1412_v57, %v1396_v13  ;;  %v1416_v20 = vadd.f32 %v1412_v57, %v1405_v38 }
 0x1ac   : > { %v1417_v61 = vsub.f32 0.0, %v1413_v0  ;;  %v1418_v25 = vsub.f32 0.0, %v1414_v15  ;;  %v1419_v7 = vsub.f32 0.0, %v1415_v32  ;;  %v1420_v30 = vsub.f32 0.0, %v1416_v20 }
 0x1ae   : > { %v1421_v42 = vmul.f32 1.442695, %v1417_v61  ;;  %v1423_v29 = vmul.f32 1.442695, %v1418_v25  ;;  %v1425_v9 = vmul.f32 1.442695, %v1419_v7 }
 0x1af   : > { %v1427_v52 = vmul.f32 1.442695, %v1420_v30 }
 0x1b0   : > { %1766 = vpow2.f32 %v1421_v42 }
 0x1b1   : > { %1768 = vpow2.f32 %v1423_v29 }
 0x1b2   : > { %1770 = vpow2.f32 %v1425_v9 }
 0x1b3   : > { %1772 = vpow2.f32 %v1427_v52 }
 0x1b6   : > { %v1767_v60 = vpop.eup %1766 }
 0x1b7   : > { %v1769_v11 = vpop.eup %1768  ;;  %v1429_v10 = vadd.f32 1.0, %v1767_v60 }
 0x1b8   : > { %v1771_v12 = vpop.eup %1770  ;;  %v1430_v19 = vadd.f32 1.0, %v1769_v11 }
 0x1b9   : > { %v1773_v63 = vpop.eup %1772  ;;  %v1431_v22 = vadd.f32 1.0, %v1771_v12  ;;  %1774 = vrcp.f32 %v1429_v10  ;;  %v1442_v23 = vand.u32 2147483647, %v1429_v10  ;;  %v1444_v49 = vand.u32 2147483648, %v1429_v10 }
 0x1ba   : > { %v3053_v5 = vadd.f32 1.0, %v1773_v63  ;;  %1776 = vrcp.f32 %v1430_v19  ;;  %vm1438_vm0 = vweird.f32 %v1429_v10  ;;  %vm1453_vm1 = vweird.f32 %v1430_v19 }
 0x1bb   : > { %1778 = vrcp.f32 %v1431_v22  ;;  %v1457_v37 = vand.u32 2147483647, %v1430_v19  ;;  %v1459_v4 = vand.u32 2147483648, %v1430_v19  ;;  %vm3057_vm3 = vcmp.eq.f32.partialorder %v1442_v23, 8.507059e+37 }
 0x1bc   : > { %1780 = vrcp.f32 %v3053_v5  ;;  %v1445_v39 = vor.u32 1.1754944e-38, %v1444_v49  ;;  %vm1468_vm4 = vweird.f32 %v1431_v22  ;;  %v1472_v56 = vand.u32 2147483647, %v1431_v22 }
 0x1bd   : > { %v1474_v62 = vand.u32 2147483648, %v1431_v22  ;;  %v1489_v47 = vand.u32 2147483648, %v3053_v5  ;;  %v1487_v54 = vand.u32 2147483647, %v3053_v5  ;;  %vm1458_vm11 = vcmp.eq.f32.partialorder %v1457_v37, 8.507059e+37 }
 0x1be   : > { %v1460_v16 = vor.u32 1.1754944e-38, %v1459_v4  ;;  %vm1483_vm12 = vweird.f32 %v3053_v5  ;;  %vm1473_vm14 = vcmp.eq.f32.partialorder %v1472_v56, 8.507059e+37 }
 0x1bf   : > { %v1775_v43 = vpop.eup %1774  ;;  %v1475_v34 = vor.u32 1.1754944e-38, %v1474_v62  ;;  %v1490_v50 = vor.u32 1.1754944e-38, %v1489_v47 }
 0x1c0   : > { %v1777_v46 = vpop.eup %1776  ;;  %v1434_v53 = vmul.f32 %v1775_v43, %v1429_v10  ;;  %vm1439_vm5 = vweird.f32 %v1775_v43 }
 0x1c1   : > { %v1779_v27 = vpop.eup %1778  ;;  %v1449_v1 = vmul.f32 %v1777_v46, %v1430_v19  ;;  %vm1454_vm6 = vweird.f32 %v1777_v46  ;;  %vm3065_vm8 = vmor %vm1438_vm0, %vm1439_vm5  ;;  %vm1488_vm0 = vcmp.eq.f32.partialorder %v1487_v54, 8.507059e+37  ;;  %vm1509_vm5 = vcmp.lt.s32.totalorder %v1507_v51, 512 }
 0x1c2   : > { %v1781_v55 = vpop.eup %1780  ;;  %v1435_v2 = vsub.f32 1.0, %v1434_v53  ;;  %v1464_v35 = vmul.f32 %v1779_v27, %v1431_v22  ;;  %vm1469_vm7 = vweird.f32 %v1779_v27  ;;  %vm1455_vm10 = vmor %vm1453_vm1, %vm1454_vm6  ;;  %vm1502_vm1 = vcmask 1042434  }
 0x1c3   : > { %v1450_v40 = vsub.f32 1.0, %v1449_v1  ;;  %v1479_v59 = vmul.f32 %v1781_v55, %v3053_v5  ;;  %vm1484_vm9 = vweird.f32 %v1781_v55  ;;  %vm1470_vm13 = vmor %vm1468_vm4, %vm1469_vm7  ;;  %vm1504_vm4 = vcmask 1041408  }
 0x1c4   : > { %v1465_v48 = vsub.f32 1.0, %v1464_v35  ;;  %v1436_v28 = vmul.f32 %v1775_v43, %v1435_v2  ;;  %vm1485_vm15 = vmor %vm1483_vm12, %vm1484_vm9 }
 0x1c5   : > { %v1480_v36 = vsub.f32 1.0, %v1479_v59  ;;  %v1451_v17 = vmul.f32 %v1777_v46, %v1450_v40 }
 0x1c6   : > { %v1437_v26 = vadd.f32 %v1775_v43, %v1436_v28  ;;  %v1466_v8 = vmul.f32 %v1779_v27, %v1465_v48 }
 0x1c7   : > { %v1452_v6 = vadd.f32 %v1777_v46, %v1451_v17  ;;  %v1481_v44 = vmul.f32 %v1781_v55, %v1480_v36 }
 0x1c8   : > { %v1467_v41 = vadd.f32 %v1779_v27, %v1466_v8  ;;  %v1441_v3 = vsel %vm3065_vm8, %v1775_v43, %v1437_v26 }
 0x1c9   : > { %v1456_v14 = vsel %vm1455_vm10, %v1777_v46, %v1452_v6  ;;  %v1482_v57 = vadd.f32 %v1781_v55, %v1481_v44  ;;  %v1446_v13 = vsel %vm3057_vm3, %v1445_v39, %v1441_v3 }
 0x1ca   : > { %v1461_v58 = vsel %vm1458_vm11, %v1460_v16, %v1456_v14  ;;  %v1471_v31 = vsel %vm1470_vm13, %v1779_v27, %v1467_v41 }
 0x1cb   : > { %v1476_v21 = vsel %vm1473_vm14, %v1475_v34, %v1471_v31  ;;  %v1486_v24 = vsel %vm1485_vm15, %v1781_v55, %v1482_v57  ;;  %v1497_v45 = vrot.slane %v1461_v58, 7 }
 0x1cc   : > { %v1491_v38 = vsel %vm1488_vm0, %v1490_v50, %v1486_v24  ;;  %v1498_v0 = vrot.slane %v1476_v21, 6 }
 0x1cd   : > { %v1499_v15 = vrot.slane %v1491_v38, 5  ;;  %v1501_v32 = vsel %vm1500_vm2, %v1446_v13, %v1497_v45 }
 0x1cf   : > { %v1503_v20 = vsel %vm1502_vm1, %v1498_v0, %v1499_v15 }
 0x1d0   : > { %v1505_v61 = vsel %vm1504_vm4, %v1501_v32, %v1503_v20 }
 0x1d1   : > { %1511 = vst.msk [vmem:[%s331_s22] sm:$0xf] %vm1509_vm5, %v1505_v61 }
 0x1d2   : > { %1901 = shalt.err (!%p1898_p9)
}
 0x1d3   : > { %1645 = dma.vmem_to_hbm [thread:$0]  (%p2078_p4), %s1526_s23, 64, %s1528_s13, %s1513_s14  }
 0x1d4 PF: > { %s1539_s30 = sand.u32 1, %s1932_s26   ;;  %p3154_p10 = scmp.ge.s32.totalorder %s1944_s29, 2 }
 0x1d5   : > { %s1540_s6 = scalar_lea.sflag [#allocation5], %s1539_s30 }
 0x1d6   : > { %p1659_p13 = pnand %p3154_p10, %p2082_p6 }
 0x1d8   : > { %p1660_p11 = pneg %p1659_p13 }
 0x1da   : > { %1927 = dma.done.wait (%p1660_p11), %s1540_s6, 64  }
 0x1db   : > { %1929 = vsyncadd (%p1660_p11), %s1540_s6, 4294967232  ;;  %p23_p0 = scmp.ge.s32.totalorder %s2052_s21, 4   ;;  %s3155_s26 = smov %s1936_s27 }
 0x1dc   : > { %s3156_s27 = smov %s1940_s28  ;;  %s3157_s28 = smov %s2063_s24 }
 0x1dd   : > { %s3158_s29 = smov %s2052_s21  ;;  %25 = sbr.rel (!%p23_p0) target bundleno = 9 (0x9), region = 101 }
 0x1e2   :  { %1546 = vsyncpa [#allocation4], 1 }
 0x1e3   :  { %1548 = vsyncpa [#allocation4 + $0x1], 1 }
 0x1e4   :  { %1549 = vsyncpa [#allocation7], 1 }
 0x1e5   :  { %1550 = vsyncpa [#allocation5], 1 }
 0x1e6   :  { %1552 = vsyncpa [#allocation5 + $0x1], 1 }

</bundles_post_ra>
